<compile_context>
chip_gen: v7x
topology: tpu7x:2x2x1
jax: 0.10.0
libtpu: 0.0.40
codegen_flags: <defaults>
</compile_context>

<pallas_src>
import functools

import jax
import jax.numpy as jnp
from jax.experimental import pallas as pl
from jax.experimental.pallas import tpu as pltpu


def _crossconv_kernel(x_ref, top_ref, bot_ref, w1_ref, w2_ref, b1_ref, b2_ref,
                      o_ref, y1_ref, *, k, h_valid, add):
    """One (batch, row-tile) step of the fused cv1 -> cv2 CrossConv.

    x_ref:   (1, tH, W, C1)   bf16  input rows of this tile (no halo)
    top_ref: (1, 1, ph, W, C1) bf16 rows directly above the tile (zeros if h<0)
    bot_ref: (1, 1, ph, W, C1) bf16 rows directly below the tile (zeros if h>=H)
    w1_ref:  (k*C1, Cm) bf16        cv1 weights, k W-taps fused, BN scale folded
    w2_ref:  (k*Cm, C2) bf16        cv2 weights, k H-taps fused, BN scale folded
    b1_ref:  (1, Cm) f32            cv1 folded BN bias
    b2_ref:  (1, C2) f32            cv2 folded BN bias
    o_ref:   (1, tH, W, C2) f32     output rows of this tile
    y1_ref:  (tH + 2*ph, W, Cm) bf16 VMEM scratch: cv1 output incl. row halo
    """
    ph = k // 2
    tH, W, C1 = x_ref.shape[1], x_ref.shape[2], x_ref.shape[3]
    Cm = w1_ref.shape[1]
    C2 = w2_ref.shape[1]
    R = tH + 2 * ph
    j = pl.program_id(1)

    def conv1(xin):
        """cv1 = Conv(C1, Cm, (1,k)) + BN + SiLU on `rows` rows as ONE fused
        matmul of contraction depth k*C1 (W-taps concatenated along lanes)."""
        rows = xin.shape[0]
        zpad = jnp.zeros((rows, ph, C1), jnp.bfloat16)
        xp = jnp.concatenate([zpad, xin, zpad], axis=1)          # (rows, W+2ph, C1)
        taps = jnp.concatenate([xp[:, kw:kw + W, :] for kw in range(k)],
                               axis=-1)                          # (rows, W, k*C1)
        y = jnp.dot(taps.reshape(rows * W, k * C1), w1_ref[...],
                    preferred_element_type=jnp.float32)          # (rows*W, Cm) f32
        y = y + b1_ref[...]                                      # folded BN bias
        y = y * jax.nn.sigmoid(y)                                # SiLU in f32
        return y.reshape(rows, W, Cm).astype(jnp.bfloat16)

    # cv1 on the tile's own rows plus a tiny recompute on the 2*ph halo rows,
    # written into the VMEM scratch (keeps the main input BlockSpec
    # non-overlapping and avoids a full-tile row concat).
    y1_ref[ph:ph + tH] = conv1(x_ref[0])
    halo = jnp.concatenate([top_ref[0, 0], bot_ref[0, 0]], axis=0)  # (2*ph, W, C1)
    yh = conv1(halo)
    y1_ref[0:ph] = yh[0:ph]
    y1_ref[ph + tH:R] = yh[ph:2 * ph]

    # Rows of cv1's output that lie outside the real image must be exactly zero
    # (they act as cv2's zero padding).  Only boundary tiles pay for this.
    @pl.when(j == 0)
    def _():
        y1_ref[0:ph] = jnp.zeros((ph, W, Cm), jnp.bfloat16)

    @pl.when((j + 1) * tH + ph > h_valid)
    def _():
        rows = jax.lax.broadcasted_iota(jnp.int32, (R, 1, 1), 0)
        grow = j * tH - ph + rows            # global image row of y1_ref[r]
        y1 = y1_ref[...]
        y1_ref[...] = jnp.where(grow >= h_valid, jnp.zeros_like(y1), y1)

    # cv2 = Conv(Cm, C2, (k,1)) + BN + SiLU: the k row-shifted views of the
    # scratch are cheap leading-dim slices, fused along lanes -> ONE matmul of
    # contraction depth k*Cm.
    taps2 = jnp.concatenate([y1_ref[kh:kh + tH] for kh in range(k)],
                            axis=-1)                             # (tH, W, k*Cm)
    y2 = jnp.dot(taps2.reshape(tH * W, k * Cm), w2_ref[...],
                 preferred_element_type=jnp.float32)             # (tH*W, C2) f32
    y2 = y2 + b2_ref[...]
    y2 = y2 * jax.nn.sigmoid(y2)
    y2 = y2.reshape(tH, W, C2)

    if add:  # residual shortcut (only when C1 == C2); raw tile, no W slicing
        y2 = y2 + x_ref[0].astype(jnp.float32)

    o_ref[0] = y2.astype(o_ref.dtype)


def _vmem_plan():
    """Per-generation VMEM sizing: v5e/v6e have 128 MiB, v7x has 64 MiB."""
    try:
        cap = int(pltpu.get_tpu_info().vmem_capacity_bytes)
    except Exception:
        cap = 64 * 1024 * 1024            # conservative (v7x-sized) default
    tile_budget = int(cap * 0.55)         # what the tile picker may spend
    vmem_limit = max(32 * 1024 * 1024,
                     min(int(cap * 0.80), cap - (8 << 20)))
    return tile_budget, vmem_limit


def _pick_tile_h(H, W, C1, Cm, C2, k, budget_bytes):
    """Largest multiple-of-8 row tile whose per-step footprint fits the budget."""
    ph = k // 2
    per_row = (2 * W * C1 * 2             # bf16 input tile, double-buffered
               + 2 * W * C2 * 4           # f32 output tile, double-buffered
               + W * Cm * 2               # y1 VMEM scratch (bf16)
               + (W + 2 * ph) * C1 * 2    # W-padded bf16 copy for cv1 taps
               + W * k * C1 * 2           # cv1 fused-tap operand
               + 2 * W * Cm * 4           # cv1 f32 matmul out + SiLU temp
               + W * k * Cm * 2           # cv2 fused-tap operand
               + 2 * W * C2 * 4)          # cv2 f32 matmul out + SiLU temp
    per_row = int(per_row * 1.5) + 1      # layout padding / Mosaic-internal slack
    cap = max(8, (budget_bytes // per_row) // 8 * 8)
    h_aligned = -(-H // 8) * 8
    return max(8, min(cap, h_aligned))


def cross_conv(x_nchw, params, *, k=3, s=1, g=1, shortcut=False, tile_h=None):
    """Pallas CrossConv forward. x_nchw: (N, C1, H, W) f32 -> (N, C2, H, W)."""
    assert s == 1 and g == 1, "only s=1, g=1 (module defaults) are supported"
    assert k % 2 == 1, "symmetric SAME padding assumes odd k"
    w1, w2, b1, b2 = params
    N, C1, H, W = x_nchw.shape
    assert w1.shape[0] == k * C1
    Cm = w1.shape[1]
    C2 = w2.shape[1]
    assert w2.shape[0] == k * Cm
    add = bool(shortcut) and (C1 == C2)
    ph = k // 2

    tile_budget, vmem_limit = _vmem_plan()
    if tile_h is None:
        tile_h = _pick_tile_h(H, W, C1, Cm, C2, k, tile_budget)
    tH = int(tile_h)
    assert tH >= 8 and tH % 8 == 0, "tile_h must be a multiple of 8"
    nH = -(-H // tH)                      # cdiv: last tile padded, not rejected
    Hp = nH * tH

    # Single NCHW f32 -> NHWC bf16 pass (halves HBM read traffic; MXU still
    # accumulates in f32).  No W-halo pad here: it is built in-kernel.
    x = jnp.transpose(x_nchw, (0, 2, 3, 1)).astype(jnp.bfloat16)  # (N, H, W, C1)
    if Hp != H:
        x = jnp.pad(x, ((0, 0), (0, Hp - H), (0, 0), (0, 0)))

    # Row halos for cv2: tile j also needs input rows [j*tH-ph, j*tH) and
    # [(j+1)*tH, (j+1)*tH+ph) (zeros outside the image).  Only 2*ph*nH rows
    # total, gathered here so the main input BlockSpec never overlaps and the
    # grid stays fully auto-pipelined.
    zrow = jnp.zeros((N, ph, W, C1), jnp.bfloat16)
    tops, bots = [], []
    for j in range(nH):
        t0 = j * tH - ph
        tops.append(zrow if t0 < 0 else x[:, t0:t0 + ph])
        b0 = (j + 1) * tH
        avail = max(0, min(ph, Hp - b0))
        if avail == ph:
            bots.append(x[:, b0:b0 + ph])
        elif avail == 0:
            bots.append(zrow)
        else:
            bots.append(jnp.concatenate(
                [x[:, b0:b0 + avail], zrow[:, :ph - avail]], axis=1))
    halo_top = jnp.stack(tops, axis=1)                   # (N, nH, ph, W, C1)
    halo_bot = jnp.stack(bots, axis=1)                   # (N, nH, ph, W, C1)

    kernel = functools.partial(_crossconv_kernel, k=k, h_valid=H, add=add)
    out = pl.pallas_call(
        kernel,
        out_shape=jax.ShapeDtypeStruct((N, Hp, W, C2), jnp.float32),
        grid=(N, nH),
        in_specs=[
            pl.BlockSpec((1, tH, W, C1), lambda n, j: (n, j, 0, 0)),
            pl.BlockSpec((1, 1, ph, W, C1), lambda n, j: (n, j, 0, 0, 0)),
            pl.BlockSpec((1, 1, ph, W, C1), lambda n, j: (n, j, 0, 0, 0)),
            pl.BlockSpec((k * C1, Cm), lambda n, j: (0, 0)),
            pl.BlockSpec((k * Cm, C2), lambda n, j: (0, 0)),
            pl.BlockSpec((1, Cm), lambda n, j: (0, 0)),
            pl.BlockSpec((1, C2), lambda n, j: (0, 0)),
        ],
        out_specs=pl.BlockSpec((1, tH, W, C2), lambda n, j: (n, j, 0, 0)),
        scratch_shapes=[pltpu.VMEM((tH + 2 * ph, W, Cm), jnp.bfloat16)],
        compiler_params=pltpu.CompilerParams(
            dimension_semantics=("parallel", "parallel"),
            vmem_limit_bytes=vmem_limit),
    )(x, halo_top, halo_bot, w1, w2, b1, b2)

    out = out[:, :H]                                     # drop padded rows
    return jnp.transpose(out, (0, 3, 1, 2)).astype(x_nchw.dtype)   # NCHW


def prepare_params(wt1, wt2, sb1, sb2):
    """Torch-layout Conv+BN params -> fused-tap kernel layout.

    BN (eval-mode) scale is folded into the conv weights; the k conv taps are
    stacked along the contraction dim so each conv is a single MXU matmul.
    """
    cmid, c1, _, k = wt1.shape
    c2 = wt2.shape[0]
    # cv1: (c_, c1, 1, k) -> (k, c1, c_) -> (k*c1, c_); row index = kw*c1 + ci.
    w1 = jnp.transpose(wt1[:, :, 0, :], (2, 1, 0)) * sb1[0][None, None, :]
    # cv2: (c2, c_, k, 1) -> (k, c_, c2) -> (k*c_, c2); row index = kh*c_ + ci.
    w2 = jnp.transpose(wt2[:, :, :, 0], (2, 1, 0)) * sb2[0][None, None, :]
    return (w1.reshape(k * c1, cmid).astype(jnp.bfloat16),
            w2.reshape(k * cmid, c2).astype(jnp.bfloat16),
            sb1[1].reshape(1, cmid).astype(jnp.float32),
            sb2[1].reshape(1, c2).astype(jnp.float32))


def init_params(key, c1, c2, k=3, e=1.0, eps=1e-5):
    """Deterministic synthetic params matching the PyTorch module's shapes."""
    c_ = int(c2 * e)
    k1, k2, k3, k4 = jax.random.split(key, 4)

    # Conv2d weights (bias=False):  cv1: (c_, c1, 1, k)   cv2: (c2, c_, k, 1)
    wt1 = 0.2 * jax.random.normal(k1, (c_, c1, 1, k), jnp.float32)
    wt2 = 0.2 * jax.random.normal(k2, (c2, c_, k, 1), jnp.float32)

    def bn(key, c):  # fold BatchNorm2d (eval mode) into scale/bias
        a, b, c_key, d = jax.random.split(key, 4)
        gamma = 1.0 + 0.1 * jax.random.normal(a, (c,), jnp.float32)
        beta = 0.1 * jax.random.normal(b, (c,), jnp.float32)
        mean = 0.1 * jax.random.normal(c_key, (c,), jnp.float32)
        var = 0.5 + 0.5 * jnp.abs(jax.random.normal(d, (c,), jnp.float32))
        scale = gamma / jnp.sqrt(var + eps)
        bias = beta - mean * scale
        return jnp.stack([scale, bias], axis=0)          # (2, c)

    sb1 = bn(k3, c_)
    sb2 = bn(k4, c2)
    return prepare_params(wt1, wt2, sb1, sb2), (wt1, wt2, sb1, sb2)


def cross_conv_ref(x, wt1, wt2, sb1, sb2, k=3, shortcut=False):
    """Pure-JAX f32 reference (NCHW, same semantics as the PyTorch module)."""
    pw = k // 2
    dn = ("NCHW", "OIHW", "NCHW")
    y = jax.lax.conv_general_dilated(x, wt1, (1, 1), ((0, 0), (pw, pw)),
                                     dimension_numbers=dn)
    y = y * sb1[0][None, :, None, None] + sb1[1][None, :, None, None]
    y = y * jax.nn.sigmoid(y)
    y = jax.lax.conv_general_dilated(y, wt2, (1, 1), ((pw, pw), (0, 0)),
                                     dimension_numbers=dn)
    y = y * sb2[0][None, :, None, None] + sb2[1][None, :, None, None]
    y = y * jax.nn.sigmoid(y)
    if shortcut and x.shape[1] == y.shape[1]:
        y = x + y
    return y


if __name__ == "__main__":
    key = jax.random.PRNGKey(0)
    kx, kp = jax.random.split(key)

    N, c1, c2, H, W = 2, 4, 4, 16, 16
    x = jax.random.normal(kx, (N, c1, H, W), jnp.float32)

    kernel_params, torch_params = init_params(kp, c1, c2, k=3, e=1.0)
    wt1, wt2, sb1, sb2 = torch_params

    # tile_h=8 -> two row tiles per image (exercises halo recompute + boundary
    # zeroing); tile_h=None -> auto per-generation VMEM-sized tile (single tile
    # here, exercises the picker path).
    for shortcut, tile_h in ((False, 8), (True, 8), (False, None)):
        out = cross_conv(x, kernel_params, k=3, s=1, g=1, shortcut=shortcut,
                         tile_h=tile_h)
        out = jax.block_until_ready(out)

        ref = cross_conv_ref(x, wt1, wt2, sb1, sb2, k=3, shortcut=shortcut)
        assert out.shape == ref.shape, (out.shape, ref.shape)
        # bf16 activations + bf16 folded weights (f32 accumulation) -> loose
        # tolerance vs. the pure-f32 reference.
        err = float(jnp.max(jnp.abs(out - ref)))
        assert jnp.allclose(out, ref, atol=6e-2, rtol=6e-2), err

    print("KERNEL_OK")
</pallas_src>

<mosaic_0001>
module attributes {stable_mosaic.version = 11 : i64} {
  func.func @_crossconv_kernel(%arg0: i32, %arg1: i32, %arg2: memref<1x8x16x4xbf16, #tpu.memory_space<vmem>>, %arg3: memref<1x1x1x16x4xbf16, #tpu.memory_space<vmem>>, %arg4: memref<1x1x1x16x4xbf16, #tpu.memory_space<vmem>>, %arg5: memref<12x4xbf16, #tpu.memory_space<vmem>>, %arg6: memref<12x4xbf16, #tpu.memory_space<vmem>>, %arg7: memref<1x4xf32, #tpu.memory_space<vmem>>, %arg8: memref<1x4xf32, #tpu.memory_space<vmem>>, %arg9: memref<1x8x16x4xf32, #tpu.memory_space<vmem>>, %arg10: memref<10x16x4xbf16, #tpu.memory_space<vmem>>) attributes {dimension_semantics = [#tpu.dimension_semantics<parallel>, #tpu.dimension_semantics<parallel>], iteration_bounds = array<i64: 2, 2>, scalar_prefetch = 0 : i64, scratch_operands = 1 : i64, tpu.core_type = #tpu.core_type<tc>, window_params = [{transform_indices = @transform_0, window_bounds = array<i64: 1, 8, 16, 4>}, {transform_indices = @transform_1, window_bounds = array<i64: 1, 1, 1, 16, 4>}, {transform_indices = @transform_2, window_bounds = array<i64: 1, 1, 1, 16, 4>}, {pipeline_mode = #tpu.pipeline_mode<synchronous>, transform_indices = @transform_3, window_bounds = array<i64: 12, 4>}, {pipeline_mode = #tpu.pipeline_mode<synchronous>, transform_indices = @transform_4, window_bounds = array<i64: 12, 4>}, {pipeline_mode = #tpu.pipeline_mode<synchronous>, transform_indices = @transform_5, window_bounds = array<i64: 1, 4>}, {pipeline_mode = #tpu.pipeline_mode<synchronous>, transform_indices = @transform_6, window_bounds = array<i64: 1, 4>}, {transform_indices = @transform_7, window_bounds = array<i64: 1, 8, 16, 4>}]} {
    %c0 = arith.constant 0 : index
    %c0_0 = arith.constant 0 : index
    %c0_1 = arith.constant 0 : index
    %c0_2 = arith.constant 0 : index
    %0 = vector.load %arg2[%c0, %c0_0, %c0_1, %c0_2] : memref<1x8x16x4xbf16, #tpu.memory_space<vmem>>, vector<1x8x16x4xbf16>
    %1 = vector.shape_cast %0 : vector<1x8x16x4xbf16> to vector<8x16x4xbf16>
    %cst = arith.constant 0.000000e+00 : bf16
    %2 = vector.broadcast %cst : bf16 to vector<8x1x4xbf16>
    %3 = tpu.concatenate %2, %1, %2 in 1 : vector<8x1x4xbf16>, vector<8x16x4xbf16>, vector<8x1x4xbf16> -> vector<8x18x4xbf16>
    %4 = vector.extract_strided_slice %3 {offsets = [0, 0, 0], sizes = [8, 16, 4], strides = [1, 1, 1]} : vector<8x18x4xbf16> to vector<8x16x4xbf16>
    %5 = vector.extract_strided_slice %3 {offsets = [0, 1, 0], sizes = [8, 16, 4], strides = [1, 1, 1]} : vector<8x18x4xbf16> to vector<8x16x4xbf16>
    %6 = vector.extract_strided_slice %3 {offsets = [0, 2, 0], sizes = [8, 16, 4], strides = [1, 1, 1]} : vector<8x18x4xbf16> to vector<8x16x4xbf16>
    %7 = tpu.concatenate %4, %5, %6 in 2 : vector<8x16x4xbf16>, vector<8x16x4xbf16>, vector<8x16x4xbf16> -> vector<8x16x12xbf16>
    %8 = vector.shape_cast %7 : vector<8x16x12xbf16> to vector<128x12xbf16>
    %c0_3 = arith.constant 0 : index
    %c0_4 = arith.constant 0 : index
    %9 = vector.load %arg5[%c0_3, %c0_4] : memref<12x4xbf16, #tpu.memory_space<vmem>>, vector<12x4xbf16>
    %cst_5 = arith.constant dense<0.000000e+00> : vector<128x4xf32>
    %10 = tpu.matmul %8, %9, %cst_5 {dimension_numbers = #tpu.dot_dimension_numbers<[1], [0], [0], [1], [0, 0, 1, 1], [], []>} : vector<128x12xbf16>, vector<12x4xbf16>, vector<128x4xf32> -> vector<128x4xf32>
    %c0_6 = arith.constant 0 : index
    %c0_7 = arith.constant 0 : index
    %11 = vector.load %arg7[%c0_6, %c0_7] : memref<1x4xf32, #tpu.memory_space<vmem>>, vector<1x4xf32>
    %12 = vector.broadcast %11 : vector<1x4xf32> to vector<128x4xf32>
    %13 = arith.addf %10, %12 : vector<128x4xf32>
    %14 = arith.negf %13 : vector<128x4xf32>
    %15 = math.exp %14 : vector<128x4xf32>
    %cst_8 = arith.constant 1.000000e+00 : f32
    %16 = vector.broadcast %cst_8 : f32 to vector<128x4xf32>
    %17 = arith.addf %16, %15 : vector<128x4xf32>
    %18 = arith.divf %16, %17 : vector<128x4xf32>
    %19 = arith.mulf %13, %18 : vector<128x4xf32>
    %20 = vector.shape_cast %19 : vector<128x4xf32> to vector<8x16x4xf32>
    %21 = arith.truncf %20 : vector<8x16x4xf32> to vector<8x16x4xbf16>
    %c1 = arith.constant 1 : index
    %c0_9 = arith.constant 0 : index
    %c0_10 = arith.constant 0 : index
    %22 = vector.load %arg10[%c1, %c0_9, %c0_10] : memref<10x16x4xbf16, #tpu.memory_space<vmem>>, vector<8x16x4xbf16>
    tpu.vector_store %arg10[%c1, %c0_9, %c0_10], %21 {strides = array<i32>} : memref<10x16x4xbf16, #tpu.memory_space<vmem>>, vector<8x16x4xbf16>,
    %c0_11 = arith.constant 0 : index
    %c0_12 = arith.constant 0 : index
    %c0_13 = arith.constant 0 : index
    %c0_14 = arith.constant 0 : index
    %c0_15 = arith.constant 0 : index
    %23 = vector.load %arg3[%c0_11, %c0_12, %c0_13, %c0_14, %c0_15] : memref<1x1x1x16x4xbf16, #tpu.memory_space<vmem>>, vector<1x1x1x16x4xbf16>
    %24 = vector.shape_cast %23 : vector<1x1x1x16x4xbf16> to vector<1x16x4xbf16>
    %c0_16 = arith.constant 0 : index
    %c0_17 = arith.constant 0 : index
    %c0_18 = arith.constant 0 : index
    %c0_19 = arith.constant 0 : index
    %c0_20 = arith.constant 0 : index
    %25 = vector.load %arg4[%c0_16, %c0_17, %c0_18, %c0_19, %c0_20] : memref<1x1x1x16x4xbf16, #tpu.memory_space<vmem>>, vector<1x1x1x16x4xbf16>
    %26 = vector.shape_cast %25 : vector<1x1x1x16x4xbf16> to vector<1x16x4xbf16>
    %27 = tpu.concatenate %24, %26 in 0 : vector<1x16x4xbf16>, vector<1x16x4xbf16> -> vector<2x16x4xbf16>
    %cst_21 = arith.constant 0.000000e+00 : bf16
    %28 = vector.broadcast %cst_21 : bf16 to vector<2x1x4xbf16>
    %29 = tpu.concatenate %28, %27, %28 in 1 : vector<2x1x4xbf16>, vector<2x16x4xbf16>, vector<2x1x4xbf16> -> vector<2x18x4xbf16>
    %30 = vector.extract_strided_slice %29 {offsets = [0, 0, 0], sizes = [2, 16, 4], strides = [1, 1, 1]} : vector<2x18x4xbf16> to vector<2x16x4xbf16>
    %31 = vector.extract_strided_slice %29 {offsets = [0, 1, 0], sizes = [2, 16, 4], strides = [1, 1, 1]} : vector<2x18x4xbf16> to vector<2x16x4xbf16>
    %32 = vector.extract_strided_slice %29 {offsets = [0, 2, 0], sizes = [2, 16, 4], strides = [1, 1, 1]} : vector<2x18x4xbf16> to vector<2x16x4xbf16>
    %33 = tpu.concatenate %30, %31, %32 in 2 : vector<2x16x4xbf16>, vector<2x16x4xbf16>, vector<2x16x4xbf16> -> vector<2x16x12xbf16>
    %34 = vector.shape_cast %33 : vector<2x16x12xbf16> to vector<32x12xbf16>
    %c0_22 = arith.constant 0 : index
    %c0_23 = arith.constant 0 : index
    %35 = vector.load %arg5[%c0_22, %c0_23] : memref<12x4xbf16, #tpu.memory_space<vmem>>, vector<12x4xbf16>
    %cst_24 = arith.constant dense<0.000000e+00> : vector<32x4xf32>
    %36 = tpu.matmul %34, %35, %cst_24 {dimension_numbers = #tpu.dot_dimension_numbers<[1], [0], [0], [1], [0, 0, 1, 1], [], []>} : vector<32x12xbf16>, vector<12x4xbf16>, vector<32x4xf32> -> vector<32x4xf32>
    %c0_25 = arith.constant 0 : index
    %c0_26 = arith.constant 0 : index
    %37 = vector.load %arg7[%c0_25, %c0_26] : memref<1x4xf32, #tpu.memory_space<vmem>>, vector<1x4xf32>
    %38 = vector.broadcast %37 : vector<1x4xf32> to vector<32x4xf32>
    %39 = arith.addf %36, %38 : vector<32x4xf32>
    %40 = arith.negf %39 : vector<32x4xf32>
    %41 = math.exp %40 : vector<32x4xf32>
    %cst_27 = arith.constant 1.000000e+00 : f32
    %42 = vector.broadcast %cst_27 : f32 to vector<32x4xf32>
    %43 = arith.addf %42, %41 : vector<32x4xf32>
    %44 = arith.divf %42, %43 : vector<32x4xf32>
    %45 = arith.mulf %39, %44 : vector<32x4xf32>
    %46 = vector.shape_cast %45 : vector<32x4xf32> to vector<2x16x4xf32>
    %47 = arith.truncf %46 : vector<2x16x4xf32> to vector<2x16x4xbf16>
    %48 = vector.extract_strided_slice %47 {offsets = [0, 0, 0], sizes = [1, 16, 4], strides = [1, 1, 1]} : vector<2x16x4xbf16> to vector<1x16x4xbf16>
    %c0_28 = arith.constant 0 : index
    %c0_29 = arith.constant 0 : index
    %c0_30 = arith.constant 0 : index
    %49 = vector.load %arg10[%c0_28, %c0_29, %c0_30] : memref<10x16x4xbf16, #tpu.memory_space<vmem>>, vector<1x16x4xbf16>
    tpu.vector_store %arg10[%c0_28, %c0_29, %c0_30], %48 {strides = array<i32>} : memref<10x16x4xbf16, #tpu.memory_space<vmem>>, vector<1x16x4xbf16>,
    %50 = vector.extract_strided_slice %47 {offsets = [1, 0, 0], sizes = [1, 16, 4], strides = [1, 1, 1]} : vector<2x16x4xbf16> to vector<1x16x4xbf16>
    %c9 = arith.constant 9 : index
    %c0_31 = arith.constant 0 : index
    %c0_32 = arith.constant 0 : index
    %51 = vector.load %arg10[%c9, %c0_31, %c0_32] : memref<10x16x4xbf16, #tpu.memory_space<vmem>>, vector<1x16x4xbf16>
    tpu.vector_store %arg10[%c9, %c0_31, %c0_32], %50 {strides = array<i32>} : memref<10x16x4xbf16, #tpu.memory_space<vmem>>, vector<1x16x4xbf16>,
    %c0_i32 = arith.constant 0 : i32
    %52 = arith.cmpi eq, %arg1, %c0_i32 : i32
    %53 = arith.extui %52 : i1 to i32
    %c0_i32_33 = arith.constant 0 : i32
    %54 = arith.cmpi ne, %53, %c0_i32_33 : i32
    scf.if %54 {
      %cst_54 = arith.constant 0.000000e+00 : bf16
      %81 = vector.broadcast %cst_54 : bf16 to vector<1x16x4xbf16>
      %c0_55 = arith.constant 0 : index
      %c0_56 = arith.constant 0 : index
      %c0_57 = arith.constant 0 : index
      %82 = vector.load %arg10[%c0_55, %c0_56, %c0_57] : memref<10x16x4xbf16, #tpu.memory_space<vmem>>, vector<1x16x4xbf16>
      tpu.vector_store %arg10[%c0_55, %c0_56, %c0_57], %81 {strides = array<i32>} : memref<10x16x4xbf16, #tpu.memory_space<vmem>>, vector<1x16x4xbf16>,
    } else {
    }
    %c1_i32 = arith.constant 1 : i32
    %55 = arith.addi %arg1, %c1_i32 : i32
    %c8_i32 = arith.constant 8 : i32
    %56 = arith.muli %55, %c8_i32 : i32
    %c1_i32_34 = arith.constant 1 : i32
    %57 = arith.addi %56, %c1_i32_34 : i32
    %c16_i32 = arith.constant 16 : i32
    %58 = arith.cmpi sgt, %57, %c16_i32 : i32
    %59 = arith.extui %58 : i1 to i32
    %c0_i32_35 = arith.constant 0 : i32
    %60 = arith.cmpi ne, %59, %c0_i32_35 : i32
    scf.if %60 {
      %81 = tpu.iota {dimensions = array<i32: 0>} : vector<10x1x1xi32>
      %c8_i32_54 = arith.constant 8 : i32
      %82 = arith.muli %arg1, %c8_i32_54 : i32
      %c1_i32_55 = arith.constant 1 : i32
      %83 = arith.subi %82, %c1_i32_55 : i32
      %84 = vector.broadcast %83 : i32 to vector<10x1x1xi32>
      %85 = arith.addi %84, %81 : vector<10x1x1xi32>
      %c0_56 = arith.constant 0 : index
      %c0_57 = arith.constant 0 : index
      %c0_58 = arith.constant 0 : index
      %86 = vector.load %arg10[%c0_56, %c0_57, %c0_58] : memref<10x16x4xbf16, #tpu.memory_space<vmem>>, vector<10x16x4xbf16>
      %c16_i32_59 = arith.constant 16 : i32
      %87 = vector.broadcast %c16_i32_59 : i32 to vector<10x1x1xi32>
      %88 = arith.cmpi sge, %85, %87 : vector<10x1x1xi32>
      %cst_60 = arith.constant 0.000000e+00 : bf16
      %89 = vector.broadcast %cst_60 : bf16 to vector<10x16x4xbf16>
      %90 = vector.shape_cast %88 : vector<10x1x1xi1> to vector<10x1x1xi1>
      %91 = vector.broadcast %90 : vector<10x1x1xi1> to vector<10x16x4xi1>
      %92 = arith.select %91, %89, %86 : vector<10x16x4xi1>, vector<10x16x4xbf16>
      %c0_61 = arith.constant 0 : index
      %c0_62 = arith.constant 0 : index
      %c0_63 = arith.constant 0 : index
      %93 = vector.load %arg10[%c0_61, %c0_62, %c0_63] : memref<10x16x4xbf16, #tpu.memory_space<vmem>>, vector<10x16x4xbf16>
      tpu.vector_store %arg10[%c0_61, %c0_62, %c0_63], %92 {strides = array<i32>} : memref<10x16x4xbf16, #tpu.memory_space<vmem>>, vector<10x16x4xbf16>,
    } else {
    }
    %c0_36 = arith.constant 0 : index
    %c0_37 = arith.constant 0 : index
    %c0_38 = arith.constant 0 : index
    %61 = vector.load %arg10[%c0_36, %c0_37, %c0_38] : memref<10x16x4xbf16, #tpu.memory_space<vmem>>, vector<8x16x4xbf16>
    %c1_39 = arith.constant 1 : index
    %c0_40 = arith.constant 0 : index
    %c0_41 = arith.constant 0 : index
    %62 = vector.load %arg10[%c1_39, %c0_40, %c0_41] : memref<10x16x4xbf16, #tpu.memory_space<vmem>>, vector<8x16x4xbf16>
    %c2 = arith.constant 2 : index
    %c0_42 = arith.constant 0 : index
    %c0_43 = arith.constant 0 : index
    %63 = vector.load %arg10[%c2, %c0_42, %c0_43] : memref<10x16x4xbf16, #tpu.memory_space<vmem>>, vector<8x16x4xbf16>
    %64 = tpu.concatenate %61, %62, %63 in 2 : vector<8x16x4xbf16>, vector<8x16x4xbf16>, vector<8x16x4xbf16> -> vector<8x16x12xbf16>
    %65 = vector.shape_cast %64 : vector<8x16x12xbf16> to vector<128x12xbf16>
    %c0_44 = arith.constant 0 : index
    %c0_45 = arith.constant 0 : index
    %66 = vector.load %arg6[%c0_44, %c0_45] : memref<12x4xbf16, #tpu.memory_space<vmem>>, vector<12x4xbf16>
    %cst_46 = arith.constant dense<0.000000e+00> : vector<128x4xf32>
    %67 = tpu.matmul %65, %66, %cst_46 {dimension_numbers = #tpu.dot_dimension_numbers<[1], [0], [0], [1], [0, 0, 1, 1], [], []>} : vector<128x12xbf16>, vector<12x4xbf16>, vector<128x4xf32> -> vector<128x4xf32>
    %c0_47 = arith.constant 0 : index
    %c0_48 = arith.constant 0 : index
    %68 = vector.load %arg8[%c0_47, %c0_48] : memref<1x4xf32, #tpu.memory_space<vmem>>, vector<1x4xf32>
    %69 = vector.broadcast %68 : vector<1x4xf32> to vector<128x4xf32>
    %70 = arith.addf %67, %69 : vector<128x4xf32>
    %71 = arith.negf %70 : vector<128x4xf32>
    %72 = math.exp %71 : vector<128x4xf32>
    %cst_49 = arith.constant 1.000000e+00 : f32
    %73 = vector.broadcast %cst_49 : f32 to vector<128x4xf32>
    %74 = arith.addf %73, %72 : vector<128x4xf32>
    %75 = arith.divf %73, %74 : vector<128x4xf32>
    %76 = arith.mulf %70, %75 : vector<128x4xf32>
    %77 = vector.shape_cast %76 : vector<128x4xf32> to vector<8x16x4xf32>
    %c0_50 = arith.constant 0 : index
    %c0_51 = arith.constant 0 : index
    %c0_52 = arith.constant 0 : index
    %c0_53 = arith.constant 0 : index
    %78 = vector.load %arg9[%c0_50, %c0_51, %c0_52, %c0_53] : memref<1x8x16x4xf32, #tpu.memory_space<vmem>>, vector<1x8x16x4xf32>
    %79 = vector.shape_cast %78 : vector<1x8x16x4xf32> to vector<8x16x4xf32>
    %80 = vector.shape_cast %77 : vector<8x16x4xf32> to vector<1x8x16x4xf32>
    tpu.vector_store %arg9[%c0_50, %c0_51, %c0_52, %c0_53], %80 {strides = array<i32>} : memref<1x8x16x4xf32, #tpu.memory_space<vmem>>, vector<1x8x16x4xf32>,
    return
  }
  func.func @transform_0(%arg0: i32, %arg1: i32) -> (i32, i32, i32, i32) {
    %c0_i32 = arith.constant 0 : i32
    %c0_i32_0 = arith.constant 0 : i32
    %c0_i32_1 = arith.constant 0 : i32
    return %arg0, %arg1, %c0_i32, %c0_i32_0 : i32, i32, i32, i32
  }
  func.func @transform_1(%arg0: i32, %arg1: i32) -> (i32, i32, i32, i32, i32) {
    %c0_i32 = arith.constant 0 : i32
    %c0_i32_0 = arith.constant 0 : i32
    %c0_i32_1 = arith.constant 0 : i32
    %c0_i32_2 = arith.constant 0 : i32
    return %arg0, %arg1, %c0_i32, %c0_i32_0, %c0_i32_1 : i32, i32, i32, i32, i32
  }
  func.func @transform_2(%arg0: i32, %arg1: i32) -> (i32, i32, i32, i32, i32) {
    %c0_i32 = arith.constant 0 : i32
    %c0_i32_0 = arith.constant 0 : i32
    %c0_i32_1 = arith.constant 0 : i32
    %c0_i32_2 = arith.constant 0 : i32
    return %arg0, %arg1, %c0_i32, %c0_i32_0, %c0_i32_1 : i32, i32, i32, i32, i32
  }
  func.func @transform_3(%arg0: i32, %arg1: i32) -> (i32, i32) {
    %c0_i32 = arith.constant 0 : i32
    %c0_i32_0 = arith.constant 0 : i32
    %c0_i32_1 = arith.constant 0 : i32
    return %c0_i32, %c0_i32_0 : i32, i32
  }
  func.func @transform_4(%arg0: i32, %arg1: i32) -> (i32, i32) {
    %c0_i32 = arith.constant 0 : i32
    %c0_i32_0 = arith.constant 0 : i32
    %c0_i32_1 = arith.constant 0 : i32
    return %c0_i32, %c0_i32_0 : i32, i32
  }
  func.func @transform_5(%arg0: i32, %arg1: i32) -> (i32, i32) {
    %c0_i32 = arith.constant 0 : i32
    %c0_i32_0 = arith.constant 0 : i32
    %c0_i32_1 = arith.constant 0 : i32
    return %c0_i32, %c0_i32_0 : i32, i32
  }
  func.func @transform_6(%arg0: i32, %arg1: i32) -> (i32, i32) {
    %c0_i32 = arith.constant 0 : i32
    %c0_i32_0 = arith.constant 0 : i32
    %c0_i32_1 = arith.constant 0 : i32
    return %c0_i32, %c0_i32_0 : i32, i32
  }
  func.func @transform_7(%arg0: i32, %arg1: i32) -> (i32, i32, i32, i32) {
    %c0_i32 = arith.constant 0 : i32
    %c0_i32_0 = arith.constant 0 : i32
    %c0_i32_1 = arith.constant 0 : i32
    return %arg0, %arg1, %c0_i32, %c0_i32_0 : i32, i32, i32, i32
  }
}

</mosaic_0001>

<bundles_post_ra>
// kernel: tpu_custom_call.1
= control target key start
LH: loop header
LB: loop body
LE: loop exit
PB: predicated region body
PF: predicated region fallthrough
CT: control target
= control target key end

     0   :  { %s2239_s24 = smov 0   ;;  %s2241_s25 = smov 0   ;;  %s2825_s0 = inlined_call_operand.vmem [shape: bf16[2,16,16,4], index: 0, kind: input, shape index: {}]   ;;  %s2826_s1 = inlined_call_operand.vmem [shape: bf16[2,2,1,16,4], index: 1, kind: input, shape index: {}]   ;;  %s2827_s2 = inlined_call_operand.vmem [shape: bf16[2,2,1,16,4], index: 2, kind: input, shape index: {}]   ;;  %s2828_s3 = inlined_call_operand.vmem [shape: bf16[12,4], index: 3, kind: input, shape index: {}]   ;;  %s2829_s4 = inlined_call_operand.vmem [shape: bf16[12,4], index: 4, kind: input, shape index: {}]   ;;  %s2830_s5 = inlined_call_operand.vmem [shape: f32[1,4], index: 5, kind: input, shape index: {}]   ;;  %s2831_s6 = inlined_call_operand.vmem [shape: f32[1,4], index: 6, kind: input, shape index: {}]   ;;  %s2832_s7 = inlined_call_operand.vmem [shape: f32[2,16,16,4], index: 7, kind: output, shape index: {}]  }
   0x1   :  { %s2243_s26 = smov 0   ;;  %s2245_s27 = smov 0  }
   0x2   :  { %s2247_s28 = smov 0  }
   0x3 LB: > { %s26_s29 = sadd.s32 1, %s2186_s26  ;;  %s29_s30 = sadd.s32 1, %s2190_s27  ;;  %s2194_s28 = sphi %s2247_s28, %s17_s28   ;;  %s2190_s27 = sphi %s2245_s27, %s2839_s27   ;;  %s2186_s26 = sphi %s2243_s26, %s2838_s26   ;;  %s2182_s25 = sphi %s2241_s25, %s2837_s25   ;;  %s2178_s24 = sphi %s2239_s24, %s2836_s24  }
   0x4   : > { %p27_p0 = scmp.ge.s32.totalorder %s26_s29, 2  ;;  %p1793_p1 = scmp.ge.s32.totalorder %s2194_s28, 1 }
   0x5   : > { %p291_p2 = scmp.lt.s32.totalorder %s2194_s28, 5 }
   0x6   : > { %s2841_s29 = smov (%p27_p0, %s26_s29), 0  ;;  %s2843_s30 = smov (!%p27_p0, %s29_s30), %s2190_s27 }
   0x7   : > { %p292_p3 = pnand %p1793_p1, %p291_p2  ;;  %p31_p4 = scmp.ge.s32.totalorder %s2843_s30, 2 }
   0x8   : > { %s2272_s8 = sshll.u32 (!%p292_p3), %s2178_s24, 3  ;;  %p352_p5 = scmp.lt.s32.totalorder (!%p292_p3), %s2182_s25, 1  ;;  %vm520_vm0 = vcmask (!%p292_p3), 1040384   ;;  %vm521_vm1 = vsmask.f32 (!%p292_p3), 256  ;;  %vm668_vm2 = vcmask (!%p292_p3), 1046528  }
   0x9   : > { %s2845_s30 = smov (%p31_p4, %s2843_s30), 0  ;;  %295 = sbr.rel (%p292_p3) target bundleno = 861 (0x35d), region = 48 }
   0xa   : > { %p354_p6 = scmp.lt.s32.totalorder (!%p292_p3), %s2272_s8, 15  ;;  %p364_p7 = scmp.lt.s32.totalorder (!%p292_p3), %s2178_s24, 1  ;;  %vm2296_vm3 = vmand (!%p292_p3), %vm520_vm0, %vm521_vm1  ;;  %vm539_vm4 = vsmask.f32 (!%p292_p3), 7424  ;;  %vm774_vm5 = vcmask (!%p292_p3), 1045504   ;;  %vm709_vm6 = vcmask (!%p292_p3), 31744  }
   0xb   : > { %s2197_s18 = smov (!%p292_p3), 4   ;;  %vm726_vm7 = vcmask (!%p292_p3), 64512   ;;  %vm757_vm8 = vcmask (!%p292_p3), 97280   ;;  %p1852_p8 = scmp.ne.s32.totalorder (!%p292_p3), %s2178_s24, 0 }
  0x10   : > { %s2847_s25 = smov (!%p352_p5, %s2182_s25), 1 }
  0x11   : > { %s355_s9 = scalar_select %p354_p6, %s2272_s8, 15 }
  0x12   : > { %s1796_s10 = sshll.u32 %s2847_s25, 5  ;;  %s1799_s21 = sshll.u32 %s2847_s25, 2 }
  0x13   : > { %s1795_s11 = sshll.u32 %s355_s9, 1 }
  0x14   : > { %s358_s12 = sadd.s32 %s1796_s10, %s1795_s11 }
  0x15   : > { %s1797_s13 = sshll.u32 %s358_s12, 2  ;;  %s1807_s14 = sshll.u32 %s358_s12, 3 }
  0x16   : > { %s2283_s17 = scalar_lea.vmem %s2825_s0, %s1797_s13  ;;  %s2288_s20 = scalar_lea.vmem %s2832_s7, %s1807_s14 }
  0x17   : > { %v1996_v0 = vld [vmem:[%s2283_s17 + $0x10] sm:$0xff]   ;;  %v1997_v1 = vld [vmem:[%s2283_s17] sm:$0xff]   ;;  %s2294_s22 = scalar_select %p364_p7, %s2178_s24, 1  ;;  %v1998_v7 = vld [vmem:[%s2283_s17 + $0x8] sm:$0xff]  }
  0x18   : > { %v463_v2 = vshrl.u32 %v1996_v0, 16  ;;  %v466_v3 = vshll.u32 %v1996_v0, 16  ;;  %v449_v5 = vshrl.u32 %v1997_v1, 16  ;;  %v452_v6 = vshll.u32 %v1997_v1, 16  ;;  %v1999_v8 = vld [vmem:[%s2283_s17 + $0x18] sm:$0xff]   ;;  %v2303_v10 = vld [vmem:[%s2283_s17 + $0x28] sm:$0xff]  }
  0x19   : > { %v456_v12 = vshrl.u32 %v1998_v7, 16  ;;  %v459_v13 = vshll.u32 %v1998_v7, 16  ;;  %v470_v14 = vshrl.u32 %v1999_v8, 16  ;;  %v473_v17 = vshll.u32 %v1999_v8, 16  ;;  %s1798_s23 = sshll.u32 %s2294_s22, 1  ;;  %v2001_v35 = vld [vmem:[%s2283_s17 + $0x20] sm:$0xff]  }
  0x1a   : > { %v465_v9 = vrot.slane %v463_v2, 7  ;;  %v451_v11 = vrot.slane %v449_v5, 7  ;;  %v484_v18 = vshrl.u32 %v2303_v10, 16  ;;  %s368_s9 = sadd.s32 %s1799_s21, %s1798_s23  ;;  %s2196_s13 = smov 8   ;;  %v487_v54 = vshll.u32 %v2303_v10, 16 }
  0x1b   : > { %v458_v22 = vrot.slane %v456_v12, 7  ;;  %v472_v26 = vrot.slane %v470_v14, 7  ;;  %s1800_s10 = sshll.u32 %s368_s9, 2  ;;  %v477_v55 = vshrl.u32 %v2001_v35, 16  ;;  %v480_v59 = vshll.u32 %v2001_v35, 16 }
  0x1c   : > { %v468_v15 = vor.u32 %v466_v3, %v465_v9  ;;  %v2307_v16 = vsel %vm2296_vm3, %v465_v9, 0  ;;  %v454_v20 = vor.u32 %v452_v6, %v451_v11  ;;  %v531_v21 = vsel %vm2296_vm3, %v451_v11, 0  ;;  %s2334_s12 = scalar_lea.vmem %s2826_s1, %s1800_s10  ;;  %s2356_s16 = scalar_lea.vmem %s2827_s2, %s1800_s10 }
  0x1d   : > { %v676_v19 = vrot.slane %v2307_v16, 1  ;;  %v670_v24 = vrot.slane %v531_v21, 1  ;;  %v548_v25 = vshll.u32 %v531_v21, 16  ;;  %v461_v29 = vor.u32 %v459_v13, %v458_v22  ;;  %v2002_v5 = vld [vmem:[%s2334_s12] sm:$0xff]  }
  0x1e   : > { %v2316_v23 = vsel %vm2296_vm3, 0, %v468_v15  ;;  %v2323_v28 = vsel %vm2296_vm3, 0, %v454_v20  ;;  %v532_v30 = vsel %vm2296_vm3, %v458_v22, 0  ;;  %v475_v39 = vor.u32 %v473_v17, %v472_v26 }
  0x1f   : > { %v675_v27 = vrot.slane %v2316_v23, 1  ;;  %v669_v31 = vrot.slane %v2323_v28, 1  ;;  %v673_v32 = vrot.slane %v532_v30, 1  ;;  %v541_v33 = vshrl.u32 %v2323_v28, 16 }
  0x20   : > { %v543_v34 = vshll.u32 %v2323_v28, 16  ;;  %v2339_v37 = vsel %vm2296_vm3, 0, %v461_v29  ;;  %v550_v38 = vrot.slane %v548_v25, 1  ;;  %v534_v43 = vsel %vm2296_vm3, %v472_v26, 0 }
  0x21   : > { %v677_v36 = vsel %vm668_vm2, %v675_v27, %v676_v19  ;;  %v671_v40 = vsel %vm668_vm2, %v669_v31, %v670_v24  ;;  %v672_v41 = vrot.slane %v2339_v37, 1  ;;  %v2349_v44 = vsel %vm2296_vm3, 0, %v475_v39 }
  0x22   : > { %697 = vrot.lane.b32.xlu0 %v677_v36, %s2196_s13  ;;  %v545_v42 = vrot.slane %v543_v34, 1  ;;  %693 = vrot.lane.b32.xlu1 %v671_v40, %s2196_s13  ;;  %v679_v45 = vrot.slane %v534_v43, 1  ;;  %v553_v46 = vshrl.u32 %v2339_v37, 16  ;;  %v555_v47 = vshll.u32 %v2339_v37, 16 }
  0x23   : > { %v674_v48 = vsel %vm668_vm2, %v672_v41, %v673_v32  ;;  %v678_v50 = vrot.slane %v2349_v44, 1  ;;  %v560_v51 = vshll.u32 %v532_v30, 16  ;;  %v486_v53 = vrot.slane %v484_v18, 7 }
  0x24   : > { %v546_v49 = vor.u32 %v545_v42, %v541_v33  ;;  %v557_v52 = vrot.slane %v555_v47, 1  ;;  %v479_v63 = vrot.slane %v477_v55, 7  ;;  %v577_v1 = vshrl.u32 %v2349_v44, 16  ;;  %v2004_v42 = vld [vmem:[%s2283_s17 + $0x38] sm:$0xff]   ;;  %v2005_v55 = vld [vmem:[%s2356_s16] sm:$0xff]  }
  0x25   : > { %v680_v57 = vsel %vm668_vm2, %v678_v50, %v679_v45  ;;  %v562_v58 = vrot.slane %v560_v51, 1  ;;  %v489_v61 = vor.u32 %v487_v54, %v486_v53  ;;  %v536_v62 = vsel %vm2296_vm3, %v486_v53, 0 }
  0x26   : > { %v551_v56 = vsel %vm539_vm4, %v546_v49, %v550_v38  ;;  %695 = vrot.lane.b32.xlu1 %v674_v48, %s2196_s13  ;;  %v558_v60 = vor.u32 %v557_v52, %v553_v46  ;;  %v685_v0 = vrot.slane %v536_v62, 1  ;;  %v579_v2 = vshll.u32 %v2349_v44, 16 }
  0x27   : > { %636 = vrot.lane.b32.xlu0 %v551_v56, %s2197_s18  ;;  %v584_v3 = vshll.u32 %v534_v43, 16  ;;  %v2373_v7 = vsel %vm2296_vm3, 0, %v489_v61  ;;  %v482_v8 = vor.u32 %v480_v59, %v479_v63  ;;  %v535_v9 = vsel %vm2296_vm3, %v479_v63, 0 }
  0x28   : > { %v563_v6 = vsel %vm539_vm4, %v558_v60, %v562_v58  ;;  %v684_v10 = vrot.slane %v2373_v7, 1  ;;  %v682_v11 = vrot.slane %v535_v9, 1  ;;  %v581_v12 = vrot.slane %v579_v2, 1 }
  0x29   : > { %v586_v13 = vrot.slane %v584_v3, 1  ;;  %v2382_v14 = vsel %vm2296_vm3, 0, %v482_v8  ;;  %v565_v15 = vshrl.u32 %v2316_v23, 16  ;;  %v567_v17 = vshll.u32 %v2316_v23, 16 }
  0x2a   : > { %699 = vrot.lane.b32.xlu1 %v680_v57, %s2196_s13  ;;  %v572_v18 = vshll.u32 %v2307_v16, 16  ;;  %v686_v19 = vsel %vm668_vm2, %v684_v10, %v685_v0  ;;  %v681_v20 = vrot.slane %v2382_v14, 1  ;;  %v582_v21 = vor.u32 %v581_v12, %v577_v1  ;;  %v2003_v16 = vld [vmem:[%s2283_s17 + $0x30] sm:$0xff]  }
  0x2b   : > { %638 = vrot.lane.b32.xlu0 %v563_v6, %s2197_s18  ;;  %v1019_v22 = vshrl.u32 %v2002_v5, 16  ;;  %v569_v24 = vrot.slane %v567_v17, 1  ;;  %v1022_v26 = vshll.u32 %v2002_v5, 16  ;;  %v589_v27 = vshrl.u32 %v2382_v14, 16 }
  0x2c   : > { %v574_v25 = vrot.slane %v572_v18, 1  ;;  %v683_v29 = vsel %vm668_vm2, %v681_v20, %v682_v11  ;;  %v587_v30 = vsel %vm539_vm4, %v582_v21, %v586_v13  ;;  %v591_v32 = vshll.u32 %v2382_v14, 16 }
  0x2d   : > { %v1021_v31 = vrot.slane %v1019_v22, 7  ;;  %v570_v33 = vor.u32 %v569_v24, %v565_v15  ;;  %v596_v34 = vshll.u32 %v535_v9, 16  ;;  %v601_v35 = vshrl.u32 %v2373_v7, 16  ;;  %v2006_v22 = vld [vmem:[%s2828_s3] sm:$0x3f]  }
  0x2e   : > { %703 = vrot.lane.b32.xlu1 %v686_v19, %s2196_s13  ;;  %v603_v36 = vshll.u32 %v2373_v7, 16  ;;  %v593_v40 = vrot.slane %v591_v32, 1  ;;  %v608_v41 = vshll.u32 %v536_v62, 16  ;;  %v491_v50 = vshrl.u32 %v2003_v16, 16  ;;  %1950 = vmatprep.subr.msk.bf16.mxu0 %vm774_vm5, %v2006_v22 }
  0x2f   : > { %701 = vrot.lane.b32.xlu0 %v683_v29, %s2196_s13  ;;  %v1024_v38 = vor.u32 %v1022_v26, %v1021_v31  ;;  %v2400_v39 = vsel %vm2296_vm3, %v1021_v31, 0  ;;  %v575_v43 = vsel %vm539_vm4, %v570_v33, %v574_v25  ;;  %v598_v46 = vrot.slane %v596_v34, 1  ;;  %v2007_v29 = vld [vmem:[%s2828_s3] sm:$0x3f]  }
  0x30   : > { %v1048_v45 = vshll.u32 %v2400_v39, 16  ;;  %v605_v47 = vrot.slane %v603_v36, 1  ;;  %v594_v49 = vor.u32 %v593_v40, %v589_v27  ;;  %v610_v54 = vrot.slane %v608_v41, 1  ;;  %1951 = vmatprep.subr.msk.bf16.mxu1 %vm774_vm5, %v2007_v29 }
  0x31   : > { %v2407_v48 = vsel %vm2296_vm3, 0, %v1024_v38  ;;  %v493_v57 = vrot.slane %v491_v50, 7  ;;  %v494_v58 = vshll.u32 %v2003_v16, 16  ;;  %v498_v59 = vshrl.u32 %v2004_v42, 16 }
  0x32   : > { %642 = vrot.lane.b32.xlu1 %v587_v30, %s2197_s18  ;;  %v1041_v51 = vshrl.u32 %v2407_v48, 16  ;;  %v1043_v52 = vshll.u32 %v2407_v48, 16  ;;  %v606_v53 = vor.u32 %v605_v47, %v601_v35  ;;  %v599_v56 = vsel %vm539_vm4, %v594_v49, %v598_v46 }
  0x33   : > { %640 = vrot.lane.b32.xlu0 %v575_v43, %s2197_s18  ;;  %v1050_v61 = vrot.slane %v1048_v45, 1  ;;  %v501_v62 = vshll.u32 %v2004_v42, 16  ;;  %v496_v63 = vor.u32 %v494_v58, %v493_v57  ;;  %v537_v0 = vsel %vm2296_vm3, %v493_v57, 0 }
  0x34   : > { %v1045_v60 = vrot.slane %v1043_v52, 1  ;;  %v500_v1 = vrot.slane %v498_v59, 7  ;;  %v611_v3 = vsel %vm539_vm4, %v606_v53, %v610_v54  ;;  %v620_v5 = vshll.u32 %v537_v0, 16 }
  0x35   : > { %v1026_v6 = vshrl.u32 %v2005_v55, 16  ;;  %v2421_v8 = vsel %vm2296_vm3, 0, %v496_v63  ;;  %v688_v9 = vrot.slane %v537_v0, 1  ;;  %v1029_v27 = vshll.u32 %v2005_v55, 16 }
  0x36   : > { %v1046_v2 = vor.u32 %v1045_v60, %v1041_v51  ;;  %v503_v10 = vor.u32 %v501_v62, %v500_v1  ;;  %v538_v11 = vsel %vm2296_vm3, %v500_v1, 0  ;;  %v613_v13 = vshrl.u32 %v2421_v8, 16 }
  0x37   : > { %644 = vrot.lane.b32.xlu0 %v599_v56, %s2197_s18  ;;  %v615_v15 = vshll.u32 %v2421_v8, 16  ;;  %v622_v17 = vrot.slane %v620_v5, 1  ;;  %v687_v18 = vrot.slane %v2421_v8, 1  ;;  %v632_v20 = vshll.u32 %v538_v11, 16 }
  0x38   : > { %v1051_v12 = vsel %vm539_vm4, %v1046_v2, %v1050_v61  ;;  %v2432_v19 = vsel %vm2296_vm3, 0, %v503_v10  ;;  %v1028_v21 = vrot.slane %v1026_v6, 7  ;;  %v1072_v34 = vrot.slane %v2407_v48, 1 }
  0x39   : > { %1064 = vrot.lane.b32.xlu1 %v1051_v12, %s2197_s18  ;;  %v617_v24 = vrot.slane %v615_v15, 1  ;;  %v625_v25 = vshrl.u32 %v2432_v19, 16  ;;  %v627_v26 = vshll.u32 %v2432_v19, 16  ;;  %v634_v16 = vrot.slane %v632_v20, 1 }
  0x3a   : > { %v1039_v30 = vsel %vm2296_vm3, %v1028_v21, 0  ;;  %v1031_v33 = vor.u32 %v1029_v27, %v1028_v21  ;;  %v1073_v35 = vrot.slane %v2400_v39, 1  ;;  %v689_v40 = vsel %vm668_vm2, %v687_v18, %v688_v9 }
  0x3b   : > { %v618_v31 = vor.u32 %v617_v24, %v613_v13  ;;  %v629_v32 = vrot.slane %v627_v26, 1  ;;  %v1060_v36 = vshll.u32 %v1039_v30, 16  ;;  %v776_v46 = vsel %vm774_vm5, %v2006_v22, 0 }
  0x3c   : > { %v2451_v42 = vsel %vm2296_vm3, 0, %v1031_v33  ;;  %1909 = vmatpush3.bf16.msra.mxu0 %v776_v46  ;;  %v1109_v49 = vsel %vm774_vm5, %v2007_v29, 0  ;;  %v1074_v50 = vsel %vm668_vm2, %v1072_v34, %v1073_v35  ;;  %v1076_v52 = vrot.slane %v1039_v30, 1  ;;  %v2516_v34 = vld [vmem:[%s2830_s5] ss:$0 sm:$0xff] }
  0x3d   : > { %646 = vrot.lane.b32.xlu1 %v611_v3, %s2197_s18  ;;  %v623_v38 = vsel %vm539_vm4, %v618_v31, %v622_v17  ;;  %v630_v41 = vor.u32 %v629_v32, %v625_v25  ;;  %v1053_v43 = vshrl.u32 %v2451_v42, 16  ;;  %v1055_v39 = vshll.u32 %v2451_v42, 16  ;;  %1927 = vmatpush3.bf16.msra.mxu1 %v1109_v49 }
  0x3e   : > { %648 = vrot.lane.b32.xlu0 %v623_v38, %s2197_s18  ;;  %v1062_v4 = vrot.slane %v1060_v36, 1  ;;  %v1075_v51 = vrot.slane %v2451_v42, 1  ;;  %v690_v54 = vrot.slane %v2432_v19, 1  ;;  %v691_v55 = vrot.slane %v538_v11, 1 }
  0x3f   : > { %v635_v45 = vsel %vm539_vm4, %v630_v41, %v634_v16  ;;  %v1057_v47 = vrot.slane %v1055_v39, 1 }
  0x40   : > { %v1077_v57 = vsel %vm668_vm2, %v1075_v51, %v1076_v52  ;;  %v692_v58 = vsel %vm668_vm2, %v690_v54, %v691_v55 }
  0x41   : > { %705 = vrot.lane.b32.xlu1 %v689_v40, %s2196_s13  ;;  %v1058_v53 = vor.u32 %v1057_v47, %v1053_v43 }
  0x42   : > { %650 = vrot.lane.b32.xlu0 %v635_v45, %s2197_s18 }
  0x43   : > { %v1063_v56 = vsel %vm539_vm4, %v1058_v53, %v1062_v4 }
  0x45   : > { %1078 = vrot.lane.b32.xlu1 %v1074_v50, %s2196_s13 }
  0x46   : > { %1066 = vrot.lane.b32.xlu0 %v1063_v56, %s2197_s18 }
  0x49   : > { %1080 = vrot.lane.b32.xlu1 %v1077_v57, %s2196_s13 }
  0x4a   : > { %707 = vrot.lane.b32.xlu0 %v692_v58, %s2196_s13 }
  0x94   : > { %v698_v59 = vpop.permute.xlu0 %697  ;;  %v694_v60 = vpop.permute.xlu1 %693 }
  0x98   : > { %v696_v61 = vpop.permute.xlu1 %695 }
  0x99   : > { %v637_v62 = vpop.permute.xlu0 %636 }
  0x9a   : > { %v711_v63 = vsel %vm709_vm6, %v2323_v28, %v637_v62 }
  0x9b   : > { %v728_v0 = vsel %vm726_vm7, %v711_v63, %v694_v60 }
  0x9c   : > { %1910 = vmatprep.mubr.msk.bf16.mxu0 %vm757_vm8, %v728_v0  ;;  %v700_v1 = vpop.permute.xlu1 %699 }
  0x9d   : > { %v639_v2 = vpop.permute.xlu0 %638 }
  0x9e   : > { %v713_v3 = vsel %vm709_vm6, %v2339_v37, %v639_v2 }
  0x9f   : > { %v730_v5 = vsel %vm726_vm7, %v713_v3, %v696_v61 }
  0xa0   : > { %1911 = vmatmul.mubr.msk.bf16.vlgmr.msra.gmra.mrb[0].mxu0 %vm757_vm8, %v730_v5  ;;  %v704_v6 = vpop.permute.xlu1 %703 }
  0xa1   : > { %v702_v9 = vpop.permute.xlu0 %701 }
  0xa4   : > { %v643_v10 = vpop.permute.xlu1 %642 }
  0xa5   : > { %v641_v11 = vpop.permute.xlu0 %640  ;;  %v717_v28 = vsel %vm709_vm6, %v2349_v44, %v643_v10 }
  0xa6   : > { %v715_v12 = vsel %vm709_vm6, %v2316_v23, %v641_v11  ;;  %v734_v15 = vsel %vm726_vm7, %v717_v28, %v700_v1 }
  0xa7   : > { %v732_v13 = vsel %vm726_vm7, %v715_v12, %v698_v59 }
  0xa8   : > { %1914 = vmatprep.mubr.msk.bf16.mxu0 %vm757_vm8, %v732_v13 }
  0xa9   : > { %1915 = vmatmul.mubr.msk.bf16.gmra.mrb[4].mxu0 %vm757_vm8, %v734_v15  ;;  %v645_v37 = vpop.permute.xlu0 %644 }
  0xaa   : > { %v719_v17 = vsel %vm709_vm6, %v2382_v14, %v645_v37 }
  0xab   : > { %v736_v18 = vsel %vm726_vm7, %v719_v17, %v702_v9  ;;  %v1065_v20 = vpop.permute.xlu1 %1064 }
  0xac   : > { %1918 = vmatprep.mubr.msk.bf16.mxu0 %vm757_vm8, %v736_v18  ;;  %v1083_v27 = vsel %vm709_vm6, %v2407_v48, %v1065_v20 }
  0xaf   : > { %v647_v44 = vpop.permute.xlu1 %646 }
  0xb0   : > { %v721_v23 = vsel %vm709_vm6, %v2373_v7, %v647_v44  ;;  %v649_v21 = vpop.permute.xlu0 %648 }
  0xb1   : > { %v738_v22 = vsel %vm726_vm7, %v721_v23, %v704_v6  ;;  %v723_v24 = vsel %vm709_vm6, %v2421_v8, %v649_v21 }
  0xb2   : > { %1919 = vmatmul.mubr.msk.bf16.gmra.mrb[8].mxu0 %vm757_vm8, %v738_v22 }
  0xb3   : > { %v706_v25 = vpop.permute.xlu1 %705 }
  0xb4   : > { %v740_v14 = vsel %vm726_vm7, %v723_v24, %v706_v25  ;;  %v651_v26 = vpop.permute.xlu0 %650 }
  0xb5   : > { %1922 = vmatprep.mubr.msk.bf16.mxu0 %vm757_vm8, %v740_v14  ;;  %v725_v16 = vsel %vm709_vm6, %v2432_v19, %v651_v26 }
  0xb7   : > { %v1079_v29 = vpop.permute.xlu1 %1078 }
  0xb8   : > { %v1087_v7 = vsel %vm726_vm7, %v1083_v27, %v1079_v29  ;;  %v1067_v30 = vpop.permute.xlu0 %1066 }
  0xb9   : > { %1928 = vmatprep.mubr.msk.bf16.mxu1 %vm757_vm8, %v1087_v7  ;;  %v1085_v31 = vsel %vm709_vm6, %v2451_v42, %v1067_v30 }
  0xbb   : > { %v1081_v32 = vpop.permute.xlu1 %1080 }
  0xbc   : > { %v1089_v8 = vsel %vm726_vm7, %v1085_v31, %v1081_v32  ;;  %v708_v33 = vpop.permute.xlu0 %707 }
  0xbd   : > { %1929 = vmatmul.mubr.msk.bf16.vlgmr.msra.gmra.mrb[0].mxu1 %vm757_vm8, %v1089_v8  ;;  %v742_v48 = vsel %vm726_vm7, %v725_v16, %v708_v33 }
  0xbe   : > { %1923 = vmatmul.mubr.msk.bf16.gmra.mrb[12].mxu0 %vm757_vm8, %v742_v48 }
 0x173   : > { %v1912_v35 = vpop.f32.mrb[0].mxu0 }
 0x174   : > { %v2519_v36 = vadd.f32 %v1912_v35, %v2516_v34  ;;  %v812_v38 = vpop.f32.mrb[1].mxu0 }
 0x175   : > { %v2522_v40 = vadd.f32 %v2516_v34, %v812_v38  ;;  %v1913_v19 = vpop.f32.mrb[2].mxu0 }
 0x176   : > { %v1828_v41 = vmul.f32 -1.442695, %v2519_v36  ;;  %v2526_v42 = vadd.f32 %v1913_v19, %v2516_v34  ;;  %v815_v43 = vpop.f32.mrb[3].mxu0 }
 0x177   : > { %v1826_v39 = vmul.f32 -1.442695, %v2522_v40  ;;  %v2530_v45 = vadd.f32 %v2516_v34, %v815_v43 }
 0x178   : > { %2008 = vpow2.f32 %v1828_v41  ;;  %v1829_v46 = vmul.f32 -1.442695, %v2526_v42 }
 0x179   : > { %2010 = vpow2.f32 %v1826_v39  ;;  %v1827_v47 = vmul.f32 -1.442695, %v2530_v45 }
 0x17a   : > { %2012 = vpow2.f32 %v1829_v46 }
 0x17b   : > { %2014 = vpow2.f32 %v1827_v47 }
 0x17c   : > { %v1916_v4 = vpop.f32.mrb[4].mxu0 }
 0x17d   : > { %v2535_v49 = vadd.f32 %v1916_v4, %v2516_v34  ;;  %v828_v50 = vpop.f32.mrb[5].mxu0 }
 0x17e   : > { %v2538_v51 = vadd.f32 %v2516_v34, %v828_v50  ;;  %v1917_v52 = vpop.f32.mrb[6].mxu0 }
 0x17f   : > { %v1832_v53 = vmul.f32 -1.442695, %v2535_v49  ;;  %v2542_v54 = vadd.f32 %v1917_v52, %v2516_v34  ;;  %v831_v55 = vpop.f32.mrb[7].mxu0 }
 0x180   : > { %v1830_v56 = vmul.f32 -1.442695, %v2538_v51  ;;  %v2546_v57 = vadd.f32 %v2516_v34, %v831_v55 }
 0x181   : > { %2016 = vpow2.f32 %v1832_v53  ;;  %v1833_v58 = vmul.f32 -1.442695, %v2542_v54 }
 0x182   : > { %v2009_v59 = vpop.eup %2008  ;;  %2018 = vpow2.f32 %v1830_v56  ;;  %v1831_v60 = vmul.f32 -1.442695, %v2546_v57 }
 0x183   : > { %v2011_v61 = vpop.eup %2010  ;;  %v925_v62 = vadd.f32 1.0, %v2009_v59  ;;  %2020 = vpow2.f32 %v1833_v58 }
 0x184   : > { %v2013_v63 = vpop.eup %2012  ;;  %v923_v0 = vadd.f32 1.0, %v2011_v61  ;;  %2022 = vpow2.f32 %v1831_v60 }
 0x185   : > { %v2015_v1 = vpop.eup %2014  ;;  %2024 = vrcp.f32 %v925_v62  ;;  %v926_v2 = vadd.f32 1.0, %v2013_v63  ;;  %v1920_v5 = vpop.f32.mrb[8].mxu0 }
 0x186   : > { %2026 = vrcp.f32 %v923_v0  ;;  %v924_v3 = vadd.f32 1.0, %v2015_v1  ;;  %v2551_v6 = vadd.f32 %v1920_v5, %v2516_v34  ;;  %v844_v9 = vpop.f32.mrb[9].mxu0 }
 0x187   : > { %2028 = vrcp.f32 %v926_v2  ;;  %v2554_v10 = vadd.f32 %v2516_v34, %v844_v9  ;;  %v1921_v11 = vpop.f32.mrb[10].mxu0 }
 0x188   : > { %2030 = vrcp.f32 %v924_v3  ;;  %v1836_v28 = vmul.f32 -1.442695, %v2551_v6  ;;  %v2558_v12 = vadd.f32 %v1921_v11, %v2516_v34  ;;  %v847_v13 = vpop.f32.mrb[11].mxu0 }
 0x189   : > { %v1834_v15 = vmul.f32 -1.442695, %v2554_v10  ;;  %v2562_v37 = vadd.f32 %v2516_v34, %v847_v13 }
 0x18a   : > { %2032 = vpow2.f32 %v1836_v28  ;;  %v1837_v18 = vmul.f32 -1.442695, %v2558_v12 }
 0x18b   : > { %v2017_v17 = vpop.eup %2016  ;;  %2034 = vpow2.f32 %v1834_v15  ;;  %v1835_v25 = vmul.f32 -1.442695, %v2562_v37 }
 0x18c   : > { %v2019_v20 = vpop.eup %2018  ;;  %v929_v44 = vadd.f32 1.0, %v2017_v17  ;;  %2036 = vpow2.f32 %v1837_v18 }
 0x18d   : > { %v2021_v23 = vpop.eup %2020  ;;  %v927_v21 = vadd.f32 1.0, %v2019_v20 }
 0x18e   : > { %v2023_v22 = vpop.eup %2022  ;;  %2038 = vrcp.f32 %v929_v44  ;;  %v930_v24 = vadd.f32 1.0, %v2021_v23 }
 0x18f   : > { %v2025_v14 = vpop.eup %2024  ;;  %2040 = vrcp.f32 %v927_v21  ;;  %v928_v26 = vadd.f32 1.0, %v2023_v22 }
 0x190   : > { %v2027_v27 = vpop.eup %2026  ;;  %2042 = vrcp.f32 %v930_v24  ;;  %v1930_v7 = vpop.f32.mrb[0].mxu1  ;;  %v973_v31 = vmul.f32 %v2025_v14, %v2519_v36 }
 0x191   : > { %v2029_v29 = vpop.eup %2028  ;;  %2044 = vrcp.f32 %v928_v26  ;;  %v2569_v8 = vadd.f32 %v1930_v7, %v2516_v34  ;;  %v1145_v16 = vpop.f32.mrb[1].mxu1  ;;  %v971_v33 = vmul.f32 %v2027_v27, %v2522_v40 }
 0x192   : > { %v2031_v30 = vpop.eup %2030  ;;  %v974_v32 = vmul.f32 %v2029_v29, %v2526_v42  ;;  %2046 = vpow2.f32 %v1835_v25  ;;  %v1924_v35 = vpop.f32.mrb[12].mxu0  ;;  %v2574_v38 = vadd.f32 %v2516_v34, %v1145_v16 }
 0x193   : > { %v972_v48 = vmul.f32 %v2031_v30, %v2530_v45  ;;  %v1931_v19 = vpop.f32.mrb[2].mxu1  ;;  %v2577_v43 = vadd.f32 %v1924_v35, %v2516_v34  ;;  %v1850_v36 = vmul.f32 -1.442695, %v2569_v8  ;;  %v860_v42 = vpop.f32.mrb[13].mxu0 }
 0x194   : > { %v988_v41 = vpack.c.bf16 %v974_v32, %v973_v31  ;;  %v1148_v39 = vpop.f32.mrb[3].mxu1  ;;  %v2033_v46 = vpop.eup %2032  ;;  %v2581_v4 = vadd.f32 %v2516_v34, %v860_v42  ;;  %v1848_v40 = vmul.f32 -1.442695, %v2574_v38  ;;  %v2589_v55 = vadd.f32 %v1931_v19, %v2516_v34 }
 0x195   : > { %v987_v47 = vpack.c.bf16 %v972_v48, %v971_v33  ;;  %v1925_v45 = vpop.f32.mrb[14].mxu0  ;;  %v2035_v50 = vpop.eup %2034  ;;  %v933_v52 = vadd.f32 1.0, %v2033_v46  ;;  %2048 = vpow2.f32 %v1850_v36  ;;  %v1840_v60 = vmul.f32 -1.442695, %v2577_v43 }
 0x196   : > { %997 = vst.msk [vmem:[#allocation2 + $0x10] sm:$0xff] %vm709_vm6, %v988_v41  ;;  %v2586_v53 = vadd.f32 %v1925_v45, %v2516_v34  ;;  %v863_v56 = vpop.f32.mrb[15].mxu0  ;;  %v2037_v58 = vpop.eup %2036  ;;  %v931_v59 = vadd.f32 1.0, %v2035_v50  ;;  %2050 = vpow2.f32 %v1848_v40  ;;  %v1838_v63 = vmul.f32 -1.442695, %v2581_v4 }
 0x197   : > { %996 = vst.msk [vmem:[#allocation2 + $0x8] sm:$0xff] %vm709_vm6, %v987_v47  ;;  %2052 = vrcp.f32 %v933_v52  ;;  %v934_v62 = vadd.f32 1.0, %v2037_v58  ;;  %v2595_v0 = vadd.f32 %v2516_v34, %v863_v56  ;;  %v2599_v3 = vadd.f32 %v2516_v34, %v1148_v39 }
 0x198   : > { %v2039_v61 = vpop.eup %2038  ;;  %2054 = vrcp.f32 %v931_v59  ;;  %v1841_v2 = vmul.f32 -1.442695, %v2586_v53  ;;  %v1851_v9 = vmul.f32 -1.442695, %v2589_v55 }
 0x199   : > { %v2041_v1 = vpop.eup %2040  ;;  %2056 = vrcp.f32 %v934_v62  ;;  %v977_v28 = vmul.f32 %v2039_v61, %v2535_v49  ;;  %v1839_v20 = vmul.f32 -1.442695, %v2595_v0  ;;  %v1849_v23 = vmul.f32 -1.442695, %v2599_v3 }
 0x19a   : > { %v2043_v5 = vpop.eup %2042  ;;  %2058 = vpow2.f32 %v1840_v60  ;;  %v975_v17 = vmul.f32 %v2041_v1, %v2538_v51 }
 0x19b   : > { %v2045_v11 = vpop.eup %2044  ;;  %v978_v13 = vmul.f32 %v2043_v5, %v2542_v54  ;;  %2060 = vpow2.f32 %v1838_v63 }
 0x19c   : > { %v2047_v15 = vpop.eup %2046  ;;  %v976_v18 = vmul.f32 %v2045_v11, %v2546_v57  ;;  %2062 = vpow2.f32 %v1841_v2 }
 0x19d   : > { %v990_v34 = vpack.c.bf16 %v978_v13, %v977_v28  ;;  %v932_v44 = vadd.f32 1.0, %v2047_v15  ;;  %2064 = vpow2.f32 %v1851_v9 }
 0x19e   : > { %v989_v21 = vpack.c.bf16 %v976_v18, %v975_v17 }
 0x19f   : > { %999 = vst.msk [vmem:[#allocation2 + $0x20] sm:$0xff] %vm709_vm6, %v990_v34  ;;  %2066 = vrcp.f32 %v932_v44  ;;  %v2049_v49 = vpop.eup %2048 }
 0x1a0   : > { %998 = vst.msk [vmem:[#allocation2 + $0x18] sm:$0xff] %vm709_vm6, %v989_v21  ;;  %2068 = vpow2.f32 %v1839_v20  ;;  %v2051_v51 = vpop.eup %2050  ;;  %v1174_v22 = vadd.f32 1.0, %v2049_v49 }
 0x1a1   : > { %2070 = vpow2.f32 %v1849_v23  ;;  %v2053_v54 = vpop.eup %2052  ;;  %v1172_v16 = vadd.f32 1.0, %v2051_v51 }
 0x1a2   : > { %v2055_v57 = vpop.eup %2054  ;;  %v981_v14 = vmul.f32 %v2053_v54, %v2551_v6  ;;  %2072 = vrcp.f32 %v1174_v22 }
 0x1a3   : > { %v2057_v24 = vpop.eup %2056  ;;  %v979_v6 = vmul.f32 %v2055_v57, %v2554_v10 }
 0x1a4   : > { %v2059_v25 = vpop.eup %2058  ;;  %v982_v26 = vmul.f32 %v2057_v24, %v2558_v12 }
 0x1a5   : > { %v2061_v27 = vpop.eup %2060  ;;  %v937_v29 = vadd.f32 1.0, %v2059_v25 }
 0x1a6   : > { %v2063_v7 = vpop.eup %2062  ;;  %v992_v30 = vpack.c.bf16 %v982_v26, %v981_v14  ;;  %v935_v31 = vadd.f32 1.0, %v2061_v27 }
 0x1a7   : > { %v2065_v32 = vpop.eup %2064  ;;  %2074 = vrcp.f32 %v937_v29  ;;  %v938_v33 = vadd.f32 1.0, %v2063_v7 }
 0x1a8   : > { %1001 = vst.msk [vmem:[#allocation2 + $0x30] sm:$0xff] %vm709_vm6, %v992_v30  ;;  %2076 = vrcp.f32 %v935_v31  ;;  %v1175_v35 = vadd.f32 1.0, %v2065_v32 }
 0x1a9   : > { %v2067_v48 = vpop.eup %2066  ;;  %2078 = vrcp.f32 %v938_v33 }
 0x1aa   : > { %v2069_v19 = vpop.eup %2068  ;;  %v980_v12 = vmul.f32 %v2067_v48, %v2562_v37  ;;  %2080 = vrcp.f32 %v1175_v35 }
 0x1ab   : > { %v2071_v41 = vpop.eup %2070  ;;  %v936_v36 = vadd.f32 1.0, %v2069_v19  ;;  %2082 = vrcp.f32 %v1172_v16 }
 0x1ac   : > { %v991_v42 = vpack.c.bf16 %v980_v12, %v979_v6  ;;  %v1173_v39 = vadd.f32 1.0, %v2071_v41  ;;  %v2073_v46 = vpop.eup %2072 }
 0x1ad   : > { %2084 = vrcp.f32 %v936_v36  ;;  %v1186_v56 = vmul.f32 %v2073_v46, %v2569_v8 }
 0x1ae   : > { %1000 = vst.msk [vmem:[#allocation2 + $0x28] sm:$0xff] %vm709_vm6, %v991_v42  ;;  %2086 = vrcp.f32 %v1173_v39 }
 0x1b1   : > { %v2075_v47 = vpop.eup %2074 }
 0x1b2   : > { %v2077_v40 = vpop.eup %2076  ;;  %v985_v10 = vmul.f32 %v2075_v47, %v2577_v43 }
 0x1b3   : > { %v2079_v45 = vpop.eup %2078  ;;  %v983_v62 = vmul.f32 %v2077_v40, %v2581_v4  ;;  %v2198_v4 = vmov (!%p1852_p8), 0  }
 0x1b4   : > { %v2081_v50 = vpop.eup %2080  ;;  %v986_v37 = vmul.f32 %v2079_v45, %v2586_v53 }
 0x1b5   : > { %v2083_v52 = vpop.eup %2082  ;;  %v1187_v58 = vmul.f32 %v2081_v50, %v2589_v55 }
 0x1b6   : > { %v994_v60 = vpack.c.bf16 %v986_v37, %v985_v10  ;;  %v1184_v2 = vmul.f32 %v2083_v52, %v2574_v38 }
 0x1b7   : > { %v2085_v59 = vpop.eup %2084  ;;  %v1189_v63 = vpack.c.bf16 %v1187_v58, %v1186_v56  ;;  %1196 = sbr.rel (%p1852_p8) target bundleno = 447 (0x1bf), region = 52 }
 0x1b8   : > { %v2087_v61 = vpop.eup %2086  ;;  %v984_v1 = vmul.f32 %v2085_v59, %v2595_v0  ;;  %1003 = vst.msk [vmem:[#allocation2 + $0x40] sm:$0xff] %vm709_vm6, %v994_v60 }
 0x1b9   : > { %v1185_v43 = vmul.f32 %v2087_v61, %v2599_v3  ;;  %1192 = vst.msk [vmem:[#allocation2 + $0x48] sm:$0xff] %vm709_vm6, %v1189_v63 }
 0x1ba   : > { %v993_v53 = vpack.c.bf16 %v984_v1, %v983_v62 }
 0x1bb   : > { %v1188_v8 = vpack.c.bf16 %v1185_v43, %v1184_v2 }
 0x1bc   : > { %1002 = vst.msk [vmem:[#allocation2 + $0x38] sm:$0xff] %vm709_vm6, %v993_v53 }
 0x1bd   : > { %1190 = vst.msk [vmem:[#allocation2] sm:$0xff] %vm709_vm6, %v1188_v8 }
 0x1be   : > { %1197 = vst.msk [vmem:[#allocation2] sm:$0xff] %vm709_vm6, %v2198_v4 }
 0x1bf PF: > { %s1886_s10 = sadd.s32 8, %s2272_s8 }
 0x1c0   : > { %s1200_s25 = sadd.s32 1, %s1886_s10 }
 0x1c1   : > { %p1854_p9 = scmp.le.s32.totalorder %s1200_s25, 16 }
 0x1c2   : > { %s1856_s11 = sadd.s32 (!%p1854_p9), 4294967295, %s2272_s8  ;;  %v1218_v55 = vld [vmem:[#allocation2 + $0x8] sm:$0xff] (!%p1854_p9)  ;;  %v1219_v0 = vld [vmem:[#allocation2 + $0x10] sm:$0xff] (!%p1854_p9)  ;;  %v1220_v3 = vld [vmem:[#allocation2 + $0x18] sm:$0xff] (!%p1854_p9) }
 0x1c3   : > { %1204 = sbr.rel (%p1854_p9) target bundleno = 463 (0x1cf), region = 56  ;;  %v1207_v38 = vstv (!%p1854_p9), %s1856_s11  ;;  %p2632_p10 = scmp.ge.s32.totalorder (!%p1854_p9), %s1856_s11, 16  ;;  %v1221_v28 = vld [vmem:[#allocation2 + $0x20] sm:$0xff] (!%p1854_p9)  ;;  %v1222_v13 = vld [vmem:[#allocation2 + $0x28] sm:$0xff] (!%p1854_p9)  ;;  %v1223_v34 = vld [vmem:[#allocation2 + $0x30] sm:$0xff] (!%p1854_p9) }
 0x1c4   : > { %v1208_v5 = vadd.s32 (!%p1854_p9), 1, %v1207_v38  ;;  %v1209_v9 = vadd.s32 (!%p1854_p9), 2, %v1207_v38  ;;  %v1210_v11 = vadd.s32 (!%p1854_p9), 3, %v1207_v38  ;;  %v1211_v15 = vadd.s32 (!%p1854_p9), 4, %v1207_v38  ;;  %v1224_v44 = vld [vmem:[#allocation2 + $0x38] sm:$0xff] (!%p1854_p9)  ;;  %v1225_v57 = vld [vmem:[#allocation2 + $0x40] sm:$0xff] (!%p1854_p9) }
 0x1c5   : > { %v1212_v17 = vadd.s32 (!%p1854_p9), 5, %v1207_v38  ;;  %v1213_v18 = vadd.s32 (!%p1854_p9), 6, %v1207_v38  ;;  %v1214_v20 = vadd.s32 (!%p1854_p9), 7, %v1207_v38  ;;  %v1215_v23 = vadd.s32 (!%p1854_p9), 8, %v1207_v38  ;;  %v1226_v29 = vld [vmem:[#allocation2 + $0x48] sm:$0xff] (!%p1854_p9) }
 0x1c6   : > { %vm1228_vm9 = vcmp.ge.s32.totalorder (!%p1854_p9), %v1208_v5, 16  ;;  %vm1229_vm10 = vcmp.ge.s32.totalorder (!%p1854_p9), %v1209_v9, 16  ;;  %vm1230_vm11 = vcmp.ge.s32.totalorder (!%p1854_p9), %v1210_v11, 16  ;;  %vm1231_vm12 = vcmp.ge.s32.totalorder (!%p1854_p9), %v1211_v15, 16 }
 0x1c7   : > { %v1258_v49 = vsel (!%p1854_p9), %vm1228_vm9, 0, %v1218_v55  ;;  %v1259_v51 = vsel (!%p1854_p9), %vm1229_vm10, 0, %v1219_v0  ;;  %v1260_v54 = vsel (!%p1854_p9), %vm1230_vm11, 0, %v1220_v3  ;;  %v1261_v22 = vsel (!%p1854_p9), %vm1231_vm12, 0, %v1221_v28 }
 0x1c8   : > { %1268 = vst.msk [vmem:[#allocation2 + $0x8] sm:$0xff] (!%p1854_p9), %vm709_vm6, %v1258_v49  ;;  %1269 = vst.msk [vmem:[#allocation2 + $0x10] sm:$0xff] (!%p1854_p9), %vm709_vm6, %v1259_v51  ;;  %vm1232_vm13 = vcmp.ge.s32.totalorder (!%p1854_p9), %v1212_v17, 16  ;;  %vm1233_vm14 = vcmp.ge.s32.totalorder (!%p1854_p9), %v1213_v18, 16  ;;  %vm1234_vm15 = vcmp.ge.s32.totalorder (!%p1854_p9), %v1214_v20, 16  ;;  %vm1235_vm0 = vcmp.ge.s32.totalorder (!%p1854_p9), %v1215_v23, 16 }
 0x1c9   : > { %1270 = vst.msk [vmem:[#allocation2 + $0x18] sm:$0xff] (!%p1854_p9), %vm709_vm6, %v1260_v54  ;;  %1271 = vst.msk [vmem:[#allocation2 + $0x20] sm:$0xff] (!%p1854_p9), %vm709_vm6, %v1261_v22  ;;  %v1262_v24 = vsel (!%p1854_p9), %vm1232_vm13, 0, %v1222_v13  ;;  %v1263_v25 = vsel (!%p1854_p9), %vm1233_vm14, 0, %v1223_v34  ;;  %v1264_v14 = vsel (!%p1854_p9), %vm1234_vm15, 0, %v1224_v44  ;;  %v1265_v26 = vsel (!%p1854_p9), %vm1235_vm0, 0, %v1225_v57 }
 0x1ca   : > { %s2089_s24 = scalar_select %p2632_p10, 0, 255  ;;  %1272 = vst.msk [vmem:[#allocation2 + $0x28] sm:$0xff] %vm709_vm6, %v1262_v24  ;;  %1273 = vst.msk [vmem:[#allocation2 + $0x30] sm:$0xff] %vm709_vm6, %v1263_v25  ;;  %v1216_v27 = vadd.s32 9, %v1207_v38 }
 0x1cb   : > { %1274 = vst.msk [vmem:[#allocation2 + $0x38] sm:$0xff] %vm709_vm6, %v1264_v14  ;;  %1275 = vst.msk [vmem:[#allocation2 + $0x40] sm:$0xff] %vm709_vm6, %v1265_v26 }
 0x1cc   : > { %v2090_v21 = vld [vmem:[#allocation2] sm:%s2089_s24]  ;;  %vm1236_vm1 = vcmp.ge.s32.totalorder %v1216_v27, 16 }
 0x1cd   : > { %1267 = vst.msk [vmem:[#allocation2] sm:$0xff] %vm709_vm6, %v2090_v21  ;;  %v1266_v7 = vsel %vm1236_vm1, 0, %v1226_v29 }
 0x1ce   : > { %1276 = vst.msk [vmem:[#allocation2 + $0x48] sm:$0xff] %vm709_vm6, %v1266_v7 }
 0x1cf PF: > { %v2091_v16 = vld [vmem:[%s2829_s4] sm:$0x3f]  }
 0x1d0   : > { %1952 = vmatprep.subr.msk.bf16.mxu1 %vm774_vm5, %v2091_v16  ;;  %v1421_v48 = vsel %vm774_vm5, %v2091_v16, 0  ;;  %v2696_v15 = vld [vmem:[%s2831_s6] ss:$0 sm:$0xff] }
 0x1d1   : > { %1933 = vmatpush3.bf16.msra.mxu1 %v1421_v48 }
 0x1d2   : > { %v1299_v6 = vld [vmem:[#allocation2 + $0x38] sm:$0xff]  ;;  %v1292_v12 = vld [vmem:[#allocation2 + $0x40] sm:$0xff] }
 0x1d4   : > { %v1294_v30 = vld [vmem:[#allocation2 + $0x10] sm:$0xff]  ;;  %v1285_v31 = vld [vmem:[#allocation2 + $0x8] sm:$0xff]  ;;  %v1277_v36 = vld [vmem:[#allocation2] sm:$0xff] }
 0x1d5   : > { %1334 = vrot.lane.b32.xlu1 %v1294_v30, %s2196_s13  ;;  %1310 = vrot.lane.b32.xlu0 %v1285_v31, %s2197_s18  ;;  %v1295_v32 = vld [vmem:[#allocation2 + $0x18] sm:$0xff]  ;;  %v1288_v33 = vld [vmem:[#allocation2 + $0x20] sm:$0xff]  ;;  %v1301_v41 = vld [vmem:[#allocation2 + $0x48] sm:$0xff] }
 0x1d6   : > { %v1297_v35 = vld [vmem:[#allocation2 + $0x28] sm:$0xff]  ;;  %v1290_v19 = vld [vmem:[#allocation2 + $0x30] sm:$0xff] }
 0x1d9   : > { %1336 = vrot.lane.b32.xlu1 %v1295_v32, %s2196_s13  ;;  %1312 = vrot.lane.b32.xlu0 %v1294_v30, %s2197_s18 }
 0x1dd   : > { %1316 = vrot.lane.b32.xlu1 %v1288_v33, %s2197_s18  ;;  %1314 = vrot.lane.b32.xlu0 %v1295_v32, %s2197_s18 }
 0x1e1   : > { %1340 = vrot.lane.b32.xlu1 %v1297_v35, %s2196_s13  ;;  %1338 = vrot.lane.b32.xlu0 %v1288_v33, %s2196_s13 }
 0x1e5   : > { %1320 = vrot.lane.b32.xlu1 %v1290_v19, %s2197_s18  ;;  %1318 = vrot.lane.b32.xlu0 %v1297_v35, %s2197_s18 }
 0x1e9   : > { %1344 = vrot.lane.b32.xlu1 %v1299_v6, %s2196_s13  ;;  %1342 = vrot.lane.b32.xlu0 %v1290_v19, %s2196_s13 }
 0x1ed   : > { %1324 = vrot.lane.b32.xlu1 %v1292_v12, %s2197_s18  ;;  %1322 = vrot.lane.b32.xlu0 %v1299_v6, %s2197_s18 }
 0x1f1   : > { %1348 = vrot.lane.b32.xlu1 %v1301_v41, %s2196_s13  ;;  %1346 = vrot.lane.b32.xlu0 %v1292_v12, %s2196_s13 }
 0x247   : > { %v1335_v42 = vpop.permute.xlu1 %1334  ;;  %v1311_v39 = vpop.permute.xlu0 %1310 }
 0x248   : > { %v1352_v46 = vsel %vm709_vm6, %v1277_v36, %v1311_v39 }
 0x249   : > { %v1375_v47 = vsel %vm726_vm7, %v1352_v46, %v1335_v42 }
 0x24a   : > { %1934 = vmatprep.mubr.msk.bf16.mxu1 %vm757_vm8, %v1375_v47 }
 0x24b   : > { %v1337_v40 = vpop.permute.xlu1 %1336  ;;  %v1313_v45 = vpop.permute.xlu0 %1312 }
 0x24c   : > { %v1355_v50 = vsel %vm709_vm6, %v1285_v31, %v1313_v45 }
 0x24d   : > { %v1377_v10 = vsel %vm726_vm7, %v1355_v50, %v1337_v40 }
 0x24e   : > { %1935 = vmatmul.mubr.msk.bf16.vlgmr.msra.gmra.mrb[4].mxu1 %vm757_vm8, %v1377_v10 }
 0x24f   : > { %v1317_v37 = vpop.permute.xlu1 %1316  ;;  %v1315_v52 = vpop.permute.xlu0 %1314 }
 0x250   : > { %v1361_v56 = vsel %vm709_vm6, %v1295_v32, %v1317_v37  ;;  %v1358_v58 = vsel %vm709_vm6, %v1294_v30, %v1315_v52 }
 0x253   : > { %v1341_v59 = vpop.permute.xlu1 %1340  ;;  %v1339_v60 = vpop.permute.xlu0 %1338 }
 0x254   : > { %v1381_v61 = vsel %vm726_vm7, %v1361_v56, %v1341_v59  ;;  %v1379_v62 = vsel %vm726_vm7, %v1358_v58, %v1339_v60 }
 0x255   : > { %1938 = vmatprep.mubr.msk.bf16.mxu1 %vm757_vm8, %v1379_v62 }
 0x256   : > { %1939 = vmatmul.mubr.msk.bf16.gmra.mrb[8].mxu1 %vm757_vm8, %v1381_v61 }
 0x257   : > { %v1321_v63 = vpop.permute.xlu1 %1320  ;;  %v1319_v1 = vpop.permute.xlu0 %1318 }
 0x258   : > { %v1367_v2 = vsel %vm709_vm6, %v1297_v35, %v1321_v63  ;;  %v1364_v43 = vsel %vm709_vm6, %v1288_v33, %v1319_v1 }
 0x25b   : > { %v1345_v53 = vpop.permute.xlu1 %1344  ;;  %v1343_v8 = vpop.permute.xlu0 %1342 }
 0x25c   : > { %v1385_v4 = vsel %vm726_vm7, %v1367_v2, %v1345_v53  ;;  %v1383_v38 = vsel %vm726_vm7, %v1364_v43, %v1343_v8 }
 0x25d   : > { %1942 = vmatprep.mubr.msk.bf16.mxu1 %vm757_vm8, %v1383_v38 }
 0x25e   : > { %1943 = vmatmul.mubr.msk.bf16.gmra.mrb[12].mxu1 %vm757_vm8, %v1385_v4 }
 0x25f   : > { %v1325_v55 = vpop.permute.xlu1 %1324  ;;  %v1323_v0 = vpop.permute.xlu0 %1322 }
 0x260   : > { %v1373_v3 = vsel %vm709_vm6, %v1299_v6, %v1325_v55  ;;  %v1370_v5 = vsel %vm709_vm6, %v1290_v19, %v1323_v0 }
 0x263   : > { %v1349_v9 = vpop.permute.xlu1 %1348  ;;  %v1347_v11 = vpop.permute.xlu0 %1346 }
 0x264   : > { %v1389_v28 = vsel %vm726_vm7, %v1373_v3, %v1349_v9  ;;  %v1387_v13 = vsel %vm726_vm7, %v1370_v5, %v1347_v11 }
 0x265   : > { %1946 = vmatprep.mubr.msk.bf16.mxu1 %vm757_vm8, %v1387_v13 }
 0x266   : > { %1947 = vmatmul.mubr.msk.bf16.gmra.mrb[16].mxu1 %vm757_vm8, %v1389_v28 }
 0x321   : > { %v1936_v17 = vpop.f32.mrb[4].mxu1 }
 0x322   : > { %v2699_v18 = vadd.f32 %v1936_v17, %v2696_v15  ;;  %v1457_v20 = vpop.f32.mrb[5].mxu1 }
 0x323   : > { %v2702_v34 = vadd.f32 %v2696_v15, %v1457_v20  ;;  %v1937_v44 = vpop.f32.mrb[6].mxu1 }
 0x324   : > { %v1869_v23 = vmul.f32 -1.442695, %v2699_v18  ;;  %v2706_v21 = vadd.f32 %v1937_v44, %v2696_v15  ;;  %v1460_v49 = vpop.f32.mrb[7].mxu1 }
 0x325   : > { %v1867_v51 = vmul.f32 -1.442695, %v2702_v34  ;;  %v2710_v54 = vadd.f32 %v2696_v15, %v1460_v49 }
 0x326   : > { %2092 = vpow2.f32 %v1869_v23  ;;  %v1870_v57 = vmul.f32 -1.442695, %v2706_v21 }
 0x327   : > { %2094 = vpow2.f32 %v1867_v51  ;;  %v1868_v22 = vmul.f32 -1.442695, %v2710_v54 }
 0x328   : > { %2096 = vpow2.f32 %v1870_v57 }
 0x329   : > { %2098 = vpow2.f32 %v1868_v22  ;;  %v1940_v24 = vpop.f32.mrb[8].mxu1 }
 0x32a   : > { %v2715_v25 = vadd.f32 %v1940_v24, %v2696_v15  ;;  %v1473_v14 = vpop.f32.mrb[9].mxu1 }
 0x32b   : > { %v2718_v26 = vadd.f32 %v2696_v15, %v1473_v14  ;;  %v1941_v27 = vpop.f32.mrb[10].mxu1 }
 0x32c   : > { %v1873_v29 = vmul.f32 -1.442695, %v2715_v25  ;;  %v2722_v7 = vadd.f32 %v1941_v27, %v2696_v15  ;;  %v1476_v30 = vpop.f32.mrb[11].mxu1 }
 0x32d   : > { %v1871_v31 = vmul.f32 -1.442695, %v2718_v26  ;;  %v2726_v32 = vadd.f32 %v2696_v15, %v1476_v30 }
 0x32e   : > { %2100 = vpow2.f32 %v1873_v29  ;;  %v1874_v16 = vmul.f32 -1.442695, %v2722_v7 }
 0x32f   : > { %2102 = vpow2.f32 %v1871_v31  ;;  %v1872_v33 = vmul.f32 -1.442695, %v2726_v32 }
 0x330   : > { %v2093_v48 = vpop.eup %2092  ;;  %2104 = vpow2.f32 %v1874_v16 }
 0x331   : > { %v2095_v35 = vpop.eup %2094  ;;  %v1570_v19 = vadd.f32 1.0, %v2093_v48  ;;  %2106 = vpow2.f32 %v1872_v33  ;;  %v1944_v6 = vpop.f32.mrb[12].mxu1 }
 0x332   : > { %v2097_v12 = vpop.eup %2096  ;;  %v1568_v41 = vadd.f32 1.0, %v2095_v35  ;;  %v2731_v36 = vadd.f32 %v1944_v6, %v2696_v15  ;;  %v1489_v42 = vpop.f32.mrb[13].mxu1 }
 0x333   : > { %v2099_v39 = vpop.eup %2098  ;;  %2108 = vrcp.f32 %v1570_v19  ;;  %v1571_v46 = vadd.f32 1.0, %v2097_v12  ;;  %v2734_v47 = vadd.f32 %v2696_v15, %v1489_v42  ;;  %v1945_v40 = vpop.f32.mrb[14].mxu1 }
 0x334   : > { %2110 = vrcp.f32 %v1568_v41  ;;  %v1569_v45 = vadd.f32 1.0, %v2099_v39  ;;  %v1877_v50 = vmul.f32 -1.442695, %v2731_v36  ;;  %v2738_v10 = vadd.f32 %v1945_v40, %v2696_v15  ;;  %v1492_v37 = vpop.f32.mrb[15].mxu1 }
 0x335   : > { %2112 = vrcp.f32 %v1571_v46  ;;  %v1875_v52 = vmul.f32 -1.442695, %v2734_v47  ;;  %v2742_v56 = vadd.f32 %v2696_v15, %v1492_v37 }
 0x336   : > { %2114 = vrcp.f32 %v1569_v45  ;;  %v1878_v58 = vmul.f32 -1.442695, %v2738_v10 }
 0x337   : > { %2116 = vpow2.f32 %v1877_v50  ;;  %v1876_v59 = vmul.f32 -1.442695, %v2742_v56 }
 0x338   : > { %v2101_v60 = vpop.eup %2100  ;;  %2118 = vpow2.f32 %v1875_v52 }
 0x339   : > { %v2103_v61 = vpop.eup %2102  ;;  %v1574_v62 = vadd.f32 1.0, %v2101_v60  ;;  %2120 = vpow2.f32 %v1878_v58  ;;  %v1948_v63 = vpop.f32.mrb[16].mxu1 }
 0x33a   : > { %v2105_v1 = vpop.eup %2104  ;;  %v1572_v2 = vadd.f32 1.0, %v2103_v61  ;;  %2122 = vpow2.f32 %v1876_v59  ;;  %v2747_v43 = vadd.f32 %v1948_v63, %v2696_v15  ;;  %v1505_v53 = vpop.f32.mrb[17].mxu1 }
 0x33b   : > { %v2107_v8 = vpop.eup %2106  ;;  %2124 = vrcp.f32 %v1574_v62  ;;  %v1575_v4 = vadd.f32 1.0, %v2105_v1  ;;  %v2750_v38 = vadd.f32 %v2696_v15, %v1505_v53  ;;  %v1949_v55 = vpop.f32.mrb[18].mxu1 }
 0x33c   : > { %2126 = vrcp.f32 %v1572_v2  ;;  %v1573_v0 = vadd.f32 1.0, %v2107_v8  ;;  %v1881_v3 = vmul.f32 -1.442695, %v2747_v43  ;;  %v2754_v5 = vadd.f32 %v1949_v55, %v2696_v15  ;;  %v1508_v9 = vpop.f32.mrb[19].mxu1 }
 0x33d   : > { %v2109_v11 = vpop.eup %2108  ;;  %2128 = vrcp.f32 %v1575_v4  ;;  %v1879_v28 = vmul.f32 -1.442695, %v2750_v38  ;;  %v2758_v13 = vadd.f32 %v2696_v15, %v1508_v9 }
 0x33e   : > { %v2111_v17 = vpop.eup %2110  ;;  %v1618_v20 = vmul.f32 %v2109_v11, %v2699_v18  ;;  %2130 = vrcp.f32 %v1573_v0  ;;  %v1882_v44 = vmul.f32 -1.442695, %v2754_v5 }
 0x33f   : > { %v2113_v23 = vpop.eup %2112  ;;  %v1616_v49 = vmul.f32 %v2111_v17, %v2702_v34  ;;  %2132 = vpow2.f32 %v1881_v3  ;;  %v1880_v51 = vmul.f32 -1.442695, %v2758_v13 }
 0x340   : > { %v2115_v57 = vpop.eup %2114  ;;  %1634 = vst.msk [vmem:[%s2288_s20 + $0x10] sm:$0xff] %vm709_vm6, %v1618_v20  ;;  %v1619_v15 = vmul.f32 %v2113_v23, %v2706_v21  ;;  %2134 = vpow2.f32 %v1879_v28 }
 0x341   : > { %v2117_v22 = vpop.eup %2116  ;;  %1632 = vst.msk [vmem:[%s2288_s20] sm:$0xff] %vm709_vm6, %v1616_v49  ;;  %v1617_v18 = vmul.f32 %v2115_v57, %v2710_v54  ;;  %2136 = vpow2.f32 %v1882_v44 }
 0x342   : > { %v2119_v24 = vpop.eup %2118  ;;  %1635 = vst.msk [vmem:[%s2288_s20 + $0x18] sm:$0xff] %vm709_vm6, %v1619_v15  ;;  %v1578_v34 = vadd.f32 1.0, %v2117_v22  ;;  %2138 = vpow2.f32 %v1880_v51 }
 0x343   : > { %v2121_v14 = vpop.eup %2120  ;;  %1633 = vst.msk [vmem:[%s2288_s20 + $0x8] sm:$0xff] %vm709_vm6, %v1617_v18  ;;  %v1576_v27 = vadd.f32 1.0, %v2119_v24 }
 0x344   : > { %v2123_v29 = vpop.eup %2122  ;;  %2140 = vrcp.f32 %v1578_v34  ;;  %v1579_v21 = vadd.f32 1.0, %v2121_v14 }
 0x345   : > { %v2125_v30 = vpop.eup %2124  ;;  %2142 = vrcp.f32 %v1576_v27  ;;  %v1577_v31 = vadd.f32 1.0, %v2123_v29 }
 0x346   : > { %v2127_v54 = vpop.eup %2126  ;;  %v1622_v16 = vmul.f32 %v2125_v30, %v2715_v25  ;;  %2144 = vrcp.f32 %v1579_v21 }
 0x347   : > { %v2129_v33 = vpop.eup %2128  ;;  %v1620_v48 = vmul.f32 %v2127_v54, %v2718_v26  ;;  %2146 = vrcp.f32 %v1577_v31 }
 0x348   : > { %v2131_v35 = vpop.eup %2130  ;;  %1638 = vst.msk [vmem:[%s2288_s20 + $0x30] sm:$0xff] %vm709_vm6, %v1622_v16  ;;  %v1623_v19 = vmul.f32 %v2129_v33, %v2722_v7 }
 0x349   : > { %v2133_v6 = vpop.eup %2132  ;;  %1636 = vst.msk [vmem:[%s2288_s20 + $0x20] sm:$0xff] %vm709_vm6, %v1620_v48  ;;  %v1621_v12 = vmul.f32 %v2131_v35, %v2726_v32 }
 0x34a   : > { %v2135_v41 = vpop.eup %2134  ;;  %1639 = vst.msk [vmem:[%s2288_s20 + $0x38] sm:$0xff] %vm709_vm6, %v1623_v19  ;;  %v1582_v42 = vadd.f32 1.0, %v2133_v6 }
 0x34b   : > { %v2137_v25 = vpop.eup %2136  ;;  %1637 = vst.msk [vmem:[%s2288_s20 + $0x28] sm:$0xff] %vm709_vm6, %v1621_v12  ;;  %v1580_v26 = vadd.f32 1.0, %v2135_v41 }
 0x34c   : > { %v2139_v39 = vpop.eup %2138  ;;  %2148 = vrcp.f32 %v1582_v42  ;;  %v1583_v46 = vadd.f32 1.0, %v2137_v25 }
 0x34d   : > { %2150 = vrcp.f32 %v1580_v26  ;;  %v1581_v7 = vadd.f32 1.0, %v2139_v39 }
 0x34e   : > { %v2141_v40 = vpop.eup %2140  ;;  %2152 = vrcp.f32 %v1583_v46 }
 0x34f   : > { %v2143_v32 = vpop.eup %2142  ;;  %v1626_v45 = vmul.f32 %v2141_v40, %v2731_v36  ;;  %2154 = vrcp.f32 %v1581_v7 }
 0x350   : > { %v2145_v50 = vpop.eup %2144  ;;  %v1624_v37 = vmul.f32 %v2143_v32, %v2734_v47 }
 0x351   : > { %v2147_v52 = vpop.eup %2146  ;;  %1642 = vst.msk [vmem:[%s2288_s20 + $0x50] sm:$0xff] %vm709_vm6, %v1626_v45  ;;  %v1627_v58 = vmul.f32 %v2145_v50, %v2738_v10 }
 0x352   : > { %1640 = vst.msk [vmem:[%s2288_s20 + $0x40] sm:$0xff] %vm709_vm6, %v1624_v37  ;;  %v1625_v59 = vmul.f32 %v2147_v52, %v2742_v56 }
 0x353   : > { %1643 = vst.msk [vmem:[%s2288_s20 + $0x58] sm:$0xff] %vm709_vm6, %v1627_v58 }
 0x354   : > { %1641 = vst.msk [vmem:[%s2288_s20 + $0x48] sm:$0xff] %vm709_vm6, %v1625_v59 }
 0x356   : > { %v2149_v36 = vpop.eup %2148 }
 0x357   : > { %v2151_v60 = vpop.eup %2150  ;;  %v1630_v47 = vmul.f32 %v2149_v36, %v2747_v43 }
 0x358   : > { %v2153_v61 = vpop.eup %2152  ;;  %v1628_v62 = vmul.f32 %v2151_v60, %v2750_v38 }
 0x359   : > { %v2155_v63 = vpop.eup %2154  ;;  %1646 = vst.msk [vmem:[%s2288_s20 + $0x70] sm:$0xff] %vm709_vm6, %v1630_v47  ;;  %v1631_v10 = vmul.f32 %v2153_v61, %v2754_v5 }
 0x35a   : > { %1644 = vst.msk [vmem:[%s2288_s20 + $0x60] sm:$0xff] %vm709_vm6, %v1628_v62  ;;  %v1629_v56 = vmul.f32 %v2155_v63, %v2758_v13 }
 0x35b   : > { %1647 = vst.msk [vmem:[%s2288_s20 + $0x78] sm:$0xff] %vm709_vm6, %v1631_v10 }
 0x35c   : > { %1645 = vst.msk [vmem:[%s2288_s20 + $0x68] sm:$0xff] %vm709_vm6, %v1629_v56 }
 0x35d PF: > { %s17_s28 = sadd.s32 1, %s2194_s28   ;;  %s2836_s24 = smov %s2186_s26 }
 0x35e   : > { %p14_p11 = scmp.ge.s32.totalorder %s17_s28, 6   ;;  %s2837_s25 = smov %s2190_s27 }
 0x35f   : > { %s2838_s26 = smov %s2841_s29  ;;  %s2839_s27 = smov %s2845_s30 }
 0x360   :  { %16 = sbr.rel (!%p14_p11) target bundleno = 3 (0x3), region = 95 }

</bundles_post_ra>
